<compile_context>
chip_gen: v6e
topology: v6e:2x2x1
jax: 0.10.0
libtpu: 0.0.40
codegen_flags: <defaults>
</compile_context>

<pallas_src>
import jax
import jax.numpy as jnp
from jax.experimental import pallas as pl
from jax.experimental.pallas import tpu as pltpu


def _lstm_cell(gates, c, H):
    """PyTorch gate order [i, f, g, o]; gates is (B, 4H) pre-activation."""
    sig = jax.nn.sigmoid(gates)          # one full-width EUP pass
    tnh = jnp.tanh(gates)                # one full-width EUP pass
    i = sig[:, 0 * H:1 * H]
    f = sig[:, 1 * H:2 * H]
    g = tnh[:, 2 * H:3 * H]
    o = sig[:, 3 * H:4 * H]
    c_new = f * c + i * g
    h_new = o * jnp.tanh(c_new)
    return h_new, c_new


def simple_lstm_kernel(x_ref,
                       wih0_ref, whh0_ref, b0_ref,
                       wih1_ref, whh1_ref, b1_ref,
                       wih2_ref, whh2_ref, b2_ref,
                       wd_ref, bd_ref,
                       out_ref):
    B, W, _ = x_ref.shape
    H4 = b0_ref.shape[1]
    H = H4 // 4
    L = 3

    # Everything is tiny; load once, stays vreg/VMEM resident across the unrolled loop.
    x = x_ref[...]                       # (B, W, F)
    wih0 = wih0_ref[...]                 # (F, 4H)
    whh0 = whh0_ref[...]                 # (H, 4H)
    wih1 = wih1_ref[...]                 # (H, 4H)
    whh1 = whh1_ref[...]                 # (H, 4H)
    wih2 = wih2_ref[...]                 # (H, 4H)
    whh2 = whh2_ref[...]                 # (H, 4H)

    # Hoisted bias broadcasts (re-used by every unrolled diagonal).
    bias0 = jnp.broadcast_to(b0_ref[...], (B, H4))
    bias1 = jnp.broadcast_to(b1_ref[...], (B, H4))
    bias2 = jnp.broadcast_to(b2_ref[...], (B, H4))

    def dot(a, b):
        # Default precision == single bf16 MXU pass with f32 accumulation (same regime
        # as the XLA reference), so no explicit casts are needed to stay single-pass.
        return jnp.dot(a, b, preferred_element_type=jnp.float32)

    zeros = jnp.zeros((B, H), jnp.float32)
    h0 = c0 = h1 = c1 = h2 = c2 = zeros
    h2_steps = []

    # Wavefront over layer/time diagonals d = 0 .. W+L-2 (fully unrolled, W and L static).
    # On diagonal d: L0 processes t=d, L1 processes t=d-1, L2 processes t=d-2.
    for d in range(W + L - 1):
        h0p, h1p, h2p = h0, h1, h2       # previous-diagonal snapshots

        if d < W:                                        # layer 0, time t = d
            g0 = dot(x[:, d, :], wih0) + dot(h0p, whh0) + bias0
            h0, c0 = _lstm_cell(g0, c0, H)

        if 1 <= d <= W:                                  # layer 1, time t = d-1
            g1 = dot(h0p, wih1) + dot(h1p, whh1) + bias1
            h1, c1 = _lstm_cell(g1, c1, H)

        if 2 <= d <= W + 1:                              # layer 2, time t = d-2
            g2 = dot(h1p, wih2) + dot(h2p, whh2) + bias2
            h2, c2 = _lstm_cell(g2, c2, H)
            h2_steps.append(h2)

    # Flatten(start_dim=1) + Linear: one lane-dense (B, W*H) slab, one MXU matmul.
    hcat = jnp.concatenate(h2_steps, axis=1)             # (B, W*H)
    out_ref[...] = dot(hcat, wd_ref[...]) + bd_ref[...]


def simple_lstm_forward(x, params):
    """x: (batch, window, num_input_features) -> (batch, num_output_features)."""
    B, _, _ = x.shape
    O = params["bd"].shape[1]

    args = (x.astype(jnp.float32),
            params["wih0_t"], params["whh0_t"], params["b0"],
            params["wih1_t"], params["whh1_t"], params["b1"],
            params["wih2_t"], params["whh2_t"], params["b2"],
            params["wd_t"], params["bd"])

    vmem = pl.BlockSpec(memory_space=pltpu.MemorySpace.VMEM)
    return pl.pallas_call(
        simple_lstm_kernel,
        out_shape=jax.ShapeDtypeStruct((B, O), jnp.float32),
        in_specs=[vmem] * len(args),
        out_specs=vmem,
    )(*args)


def init_params(key, window, in_feats, out_feats, hidden):
    """Deterministic PyTorch-shaped parameters, pre-transposed for the kernel."""
    ks = jax.random.split(key, 16)
    stdv = 1.0 / jnp.sqrt(hidden)

    def u(k, shape):
        return jax.random.uniform(k, shape, jnp.float32, -stdv, stdv)

    torch_p = {}
    kernel_p = {}
    ki = 0
    for l in range(3):
        in_l = in_feats if l == 0 else hidden
        wih = u(ks[ki], (4 * hidden, in_l)); ki += 1
        whh = u(ks[ki], (4 * hidden, hidden)); ki += 1
        bih = u(ks[ki], (4 * hidden,)); ki += 1
        bhh = u(ks[ki], (4 * hidden,)); ki += 1
        torch_p[f"wih{l}"] = wih
        torch_p[f"whh{l}"] = whh
        torch_p[f"bih{l}"] = bih
        torch_p[f"bhh{l}"] = bhh
        kernel_p[f"wih{l}_t"] = wih.T                    # (in_l, 4H)
        kernel_p[f"whh{l}_t"] = whh.T                    # (H,    4H)
        kernel_p[f"b{l}"] = (bih + bhh)[None, :]         # (1,    4H)

    wd = u(ks[ki], (out_feats, hidden * window)); ki += 1    # torch Linear weight
    bd = u(ks[ki], (out_feats,)); ki += 1
    torch_p["wd"] = wd
    torch_p["bd"] = bd
    kernel_p["wd_t"] = wd.T                               # (W*H, O)
    kernel_p["bd"] = bd[None, :]                          # (1, O)
    return torch_p, kernel_p


def ref_forward(x, tp, hidden):
    """Plain-JAX reference matching torch.nn.LSTM(num_layers=3, batch_first)."""
    B, W, _ = x.shape
    layer_in = x.astype(jnp.float32)
    for l in range(3):
        wih, whh = tp[f"wih{l}"], tp[f"whh{l}"]
        bih, bhh = tp[f"bih{l}"], tp[f"bhh{l}"]
        h = jnp.zeros((B, hidden), jnp.float32)
        c = jnp.zeros((B, hidden), jnp.float32)
        outs = []
        for t in range(W):
            gates = layer_in[:, t, :] @ wih.T + bih + h @ whh.T + bhh
            i = jax.nn.sigmoid(gates[:, 0 * hidden:1 * hidden])
            f = jax.nn.sigmoid(gates[:, 1 * hidden:2 * hidden])
            g = jnp.tanh(gates[:, 2 * hidden:3 * hidden])
            o = jax.nn.sigmoid(gates[:, 3 * hidden:4 * hidden])
            c = f * c + i * g
            h = o * jnp.tanh(c)
            outs.append(h)
        layer_in = jnp.stack(outs, axis=1)                 # (B, W, H)
    flat = layer_in.reshape(B, -1)                         # Flatten(start_dim=1)
    return flat @ tp["wd"].T + tp["bd"]


if __name__ == "__main__":
    BATCH = 2
    WINDOW = 8
    IN_FEATS = 4
    OUT_FEATS = 4
    HIDDEN = 32

    key = jax.random.PRNGKey(0)
    kp, kx = jax.random.split(key)
    torch_p, kernel_p = init_params(kp, WINDOW, IN_FEATS, OUT_FEATS, HIDDEN)
    x = jax.random.normal(kx, (BATCH, WINDOW, IN_FEATS), jnp.float32)

    fwd = jax.jit(simple_lstm_forward)
    out = fwd(x, kernel_p)
    out = jax.block_until_ready(out)

    ref = ref_forward(x, torch_p, HIDDEN)
    assert out.shape == (BATCH, OUT_FEATS)
    assert jnp.allclose(out, ref, rtol=1e-4, atol=1e-4), (out, ref)

    print("KERNEL_OK")
</pallas_src>

<mosaic_0001>
module attributes {stable_mosaic.version = 11 : i64} {
  func.func @simple_lstm_kernel(%arg0: memref<2x8x4xf32, #tpu.memory_space<vmem>>, %arg1: memref<4x128xf32, #tpu.memory_space<vmem>>, %arg2: memref<32x128xf32, #tpu.memory_space<vmem>>, %arg3: memref<1x128xf32, #tpu.memory_space<vmem>>, %arg4: memref<32x128xf32, #tpu.memory_space<vmem>>, %arg5: memref<32x128xf32, #tpu.memory_space<vmem>>, %arg6: memref<1x128xf32, #tpu.memory_space<vmem>>, %arg7: memref<32x128xf32, #tpu.memory_space<vmem>>, %arg8: memref<32x128xf32, #tpu.memory_space<vmem>>, %arg9: memref<1x128xf32, #tpu.memory_space<vmem>>, %arg10: memref<256x4xf32, #tpu.memory_space<vmem>>, %arg11: memref<1x4xf32, #tpu.memory_space<vmem>>, %arg12: memref<2x4xf32, #tpu.memory_space<vmem>>) attributes {dimension_semantics = [], scalar_prefetch = 0 : i64, scratch_operands = 0 : i64, tpu.core_type = #tpu.core_type<tc>} {
    %c0 = arith.constant 0 : index
    %c0_0 = arith.constant 0 : index
    %c0_1 = arith.constant 0 : index
    %0 = vector.load %arg0[%c0, %c0_0, %c0_1] : memref<2x8x4xf32, #tpu.memory_space<vmem>>, vector<2x8x4xf32>
    %c0_2 = arith.constant 0 : index
    %c0_3 = arith.constant 0 : index
    %1 = vector.load %arg1[%c0_2, %c0_3] : memref<4x128xf32, #tpu.memory_space<vmem>>, vector<4x128xf32>
    %c0_4 = arith.constant 0 : index
    %c0_5 = arith.constant 0 : index
    %2 = vector.load %arg2[%c0_4, %c0_5] : memref<32x128xf32, #tpu.memory_space<vmem>>, vector<32x128xf32>
    %c0_6 = arith.constant 0 : index
    %c0_7 = arith.constant 0 : index
    %3 = vector.load %arg4[%c0_6, %c0_7] : memref<32x128xf32, #tpu.memory_space<vmem>>, vector<32x128xf32>
    %c0_8 = arith.constant 0 : index
    %c0_9 = arith.constant 0 : index
    %4 = vector.load %arg5[%c0_8, %c0_9] : memref<32x128xf32, #tpu.memory_space<vmem>>, vector<32x128xf32>
    %c0_10 = arith.constant 0 : index
    %c0_11 = arith.constant 0 : index
    %5 = vector.load %arg7[%c0_10, %c0_11] : memref<32x128xf32, #tpu.memory_space<vmem>>, vector<32x128xf32>
    %c0_12 = arith.constant 0 : index
    %c0_13 = arith.constant 0 : index
    %6 = vector.load %arg8[%c0_12, %c0_13] : memref<32x128xf32, #tpu.memory_space<vmem>>, vector<32x128xf32>
    %c0_14 = arith.constant 0 : index
    %c0_15 = arith.constant 0 : index
    %7 = vector.load %arg3[%c0_14, %c0_15] : memref<1x128xf32, #tpu.memory_space<vmem>>, vector<1x128xf32>
    %8 = vector.shape_cast %7 : vector<1x128xf32> to vector<1x128xf32>
    %9 = vector.broadcast %8 : vector<1x128xf32> to vector<2x128xf32>
    %c0_16 = arith.constant 0 : index
    %c0_17 = arith.constant 0 : index
    %10 = vector.load %arg6[%c0_16, %c0_17] : memref<1x128xf32, #tpu.memory_space<vmem>>, vector<1x128xf32>
    %11 = vector.shape_cast %10 : vector<1x128xf32> to vector<1x128xf32>
    %12 = vector.broadcast %11 : vector<1x128xf32> to vector<2x128xf32>
    %c0_18 = arith.constant 0 : index
    %c0_19 = arith.constant 0 : index
    %13 = vector.load %arg9[%c0_18, %c0_19] : memref<1x128xf32, #tpu.memory_space<vmem>>, vector<1x128xf32>
    %14 = vector.shape_cast %13 : vector<1x128xf32> to vector<1x128xf32>
    %15 = vector.broadcast %14 : vector<1x128xf32> to vector<2x128xf32>
    %cst = arith.constant 0.000000e+00 : f32
    %16 = vector.broadcast %cst : f32 to vector<2x32xf32>
    %17 = vector.extract_strided_slice %0 {offsets = [0, 0, 0], sizes = [2, 1, 4], strides = [1, 1, 1]} : vector<2x8x4xf32> to vector<2x1x4xf32>
    %18 = vector.shape_cast %17 : vector<2x1x4xf32> to vector<2x4xf32>
    %cst_20 = arith.constant dense<0.000000e+00> : vector<2x128xf32>
    %19 = tpu.matmul %18, %1, %cst_20 {dimension_numbers = #tpu.dot_dimension_numbers<[1], [0], [0], [1], [0, 0, 1, 1], [], []>} : vector<2x4xf32>, vector<4x128xf32>, vector<2x128xf32> -> vector<2x128xf32>
    %cst_21 = arith.constant dense<0.000000e+00> : vector<2x128xf32>
    %20 = tpu.matmul %16, %2, %cst_21 {dimension_numbers = #tpu.dot_dimension_numbers<[1], [0], [0], [1], [0, 0, 1, 1], [], []>} : vector<2x32xf32>, vector<32x128xf32>, vector<2x128xf32> -> vector<2x128xf32>
    %21 = arith.addf %19, %20 : vector<2x128xf32>
    %22 = arith.addf %21, %9 : vector<2x128xf32>
    %23 = arith.negf %22 : vector<2x128xf32>
    %24 = math.exp %23 : vector<2x128xf32>
    %cst_22 = arith.constant 1.000000e+00 : f32
    %25 = vector.broadcast %cst_22 : f32 to vector<2x128xf32>
    %26 = arith.addf %25, %24 : vector<2x128xf32>
    %27 = arith.divf %25, %26 : vector<2x128xf32>
    %28 = math.tanh %22 : vector<2x128xf32>
    %29 = vector.extract_strided_slice %27 {offsets = [0, 0], sizes = [2, 32], strides = [1, 1]} : vector<2x128xf32> to vector<2x32xf32>
    %30 = vector.extract_strided_slice %27 {offsets = [0, 32], sizes = [2, 32], strides = [1, 1]} : vector<2x128xf32> to vector<2x32xf32>
    %31 = vector.extract_strided_slice %28 {offsets = [0, 64], sizes = [2, 32], strides = [1, 1]} : vector<2x128xf32> to vector<2x32xf32>
    %32 = vector.extract_strided_slice %27 {offsets = [0, 96], sizes = [2, 32], strides = [1, 1]} : vector<2x128xf32> to vector<2x32xf32>
    %33 = arith.mulf %30, %16 : vector<2x32xf32>
    %34 = arith.mulf %29, %31 : vector<2x32xf32>
    %35 = arith.addf %33, %34 : vector<2x32xf32>
    %36 = math.tanh %35 : vector<2x32xf32>
    %37 = arith.mulf %32, %36 : vector<2x32xf32>
    %38 = vector.extract_strided_slice %0 {offsets = [0, 1, 0], sizes = [2, 1, 4], strides = [1, 1, 1]} : vector<2x8x4xf32> to vector<2x1x4xf32>
    %39 = vector.shape_cast %38 : vector<2x1x4xf32> to vector<2x4xf32>
    %cst_23 = arith.constant dense<0.000000e+00> : vector<2x128xf32>
    %40 = tpu.matmul %39, %1, %cst_23 {dimension_numbers = #tpu.dot_dimension_numbers<[1], [0], [0], [1], [0, 0, 1, 1], [], []>} : vector<2x4xf32>, vector<4x128xf32>, vector<2x128xf32> -> vector<2x128xf32>
    %cst_24 = arith.constant dense<0.000000e+00> : vector<2x128xf32>
    %41 = tpu.matmul %37, %2, %cst_24 {dimension_numbers = #tpu.dot_dimension_numbers<[1], [0], [0], [1], [0, 0, 1, 1], [], []>} : vector<2x32xf32>, vector<32x128xf32>, vector<2x128xf32> -> vector<2x128xf32>
    %42 = arith.addf %40, %41 : vector<2x128xf32>
    %43 = arith.addf %42, %9 : vector<2x128xf32>
    %44 = arith.negf %43 : vector<2x128xf32>
    %45 = math.exp %44 : vector<2x128xf32>
    %cst_25 = arith.constant 1.000000e+00 : f32
    %46 = vector.broadcast %cst_25 : f32 to vector<2x128xf32>
    %47 = arith.addf %46, %45 : vector<2x128xf32>
    %48 = arith.divf %46, %47 : vector<2x128xf32>
    %49 = math.tanh %43 : vector<2x128xf32>
    %50 = vector.extract_strided_slice %48 {offsets = [0, 0], sizes = [2, 32], strides = [1, 1]} : vector<2x128xf32> to vector<2x32xf32>
    %51 = vector.extract_strided_slice %48 {offsets = [0, 32], sizes = [2, 32], strides = [1, 1]} : vector<2x128xf32> to vector<2x32xf32>
    %52 = vector.extract_strided_slice %49 {offsets = [0, 64], sizes = [2, 32], strides = [1, 1]} : vector<2x128xf32> to vector<2x32xf32>
    %53 = vector.extract_strided_slice %48 {offsets = [0, 96], sizes = [2, 32], strides = [1, 1]} : vector<2x128xf32> to vector<2x32xf32>
    %54 = arith.mulf %51, %35 : vector<2x32xf32>
    %55 = arith.mulf %50, %52 : vector<2x32xf32>
    %56 = arith.addf %54, %55 : vector<2x32xf32>
    %57 = math.tanh %56 : vector<2x32xf32>
    %58 = arith.mulf %53, %57 : vector<2x32xf32>
    %cst_26 = arith.constant dense<0.000000e+00> : vector<2x128xf32>
    %59 = tpu.matmul %37, %3, %cst_26 {dimension_numbers = #tpu.dot_dimension_numbers<[1], [0], [0], [1], [0, 0, 1, 1], [], []>} : vector<2x32xf32>, vector<32x128xf32>, vector<2x128xf32> -> vector<2x128xf32>
    %cst_27 = arith.constant dense<0.000000e+00> : vector<2x128xf32>
    %60 = tpu.matmul %16, %4, %cst_27 {dimension_numbers = #tpu.dot_dimension_numbers<[1], [0], [0], [1], [0, 0, 1, 1], [], []>} : vector<2x32xf32>, vector<32x128xf32>, vector<2x128xf32> -> vector<2x128xf32>
    %61 = arith.addf %59, %60 : vector<2x128xf32>
    %62 = arith.addf %61, %12 : vector<2x128xf32>
    %63 = arith.negf %62 : vector<2x128xf32>
    %64 = math.exp %63 : vector<2x128xf32>
    %cst_28 = arith.constant 1.000000e+00 : f32
    %65 = vector.broadcast %cst_28 : f32 to vector<2x128xf32>
    %66 = arith.addf %65, %64 : vector<2x128xf32>
    %67 = arith.divf %65, %66 : vector<2x128xf32>
    %68 = math.tanh %62 : vector<2x128xf32>
    %69 = vector.extract_strided_slice %67 {offsets = [0, 0], sizes = [2, 32], strides = [1, 1]} : vector<2x128xf32> to vector<2x32xf32>
    %70 = vector.extract_strided_slice %67 {offsets = [0, 32], sizes = [2, 32], strides = [1, 1]} : vector<2x128xf32> to vector<2x32xf32>
    %71 = vector.extract_strided_slice %68 {offsets = [0, 64], sizes = [2, 32], strides = [1, 1]} : vector<2x128xf32> to vector<2x32xf32>
    %72 = vector.extract_strided_slice %67 {offsets = [0, 96], sizes = [2, 32], strides = [1, 1]} : vector<2x128xf32> to vector<2x32xf32>
    %73 = arith.mulf %70, %16 : vector<2x32xf32>
    %74 = arith.mulf %69, %71 : vector<2x32xf32>
    %75 = arith.addf %73, %74 : vector<2x32xf32>
    %76 = math.tanh %75 : vector<2x32xf32>
    %77 = arith.mulf %72, %76 : vector<2x32xf32>
    %78 = vector.extract_strided_slice %0 {offsets = [0, 2, 0], sizes = [2, 1, 4], strides = [1, 1, 1]} : vector<2x8x4xf32> to vector<2x1x4xf32>
    %79 = vector.shape_cast %78 : vector<2x1x4xf32> to vector<2x4xf32>
    %cst_29 = arith.constant dense<0.000000e+00> : vector<2x128xf32>
    %80 = tpu.matmul %79, %1, %cst_29 {dimension_numbers = #tpu.dot_dimension_numbers<[1], [0], [0], [1], [0, 0, 1, 1], [], []>} : vector<2x4xf32>, vector<4x128xf32>, vector<2x128xf32> -> vector<2x128xf32>
    %cst_30 = arith.constant dense<0.000000e+00> : vector<2x128xf32>
    %81 = tpu.matmul %58, %2, %cst_30 {dimension_numbers = #tpu.dot_dimension_numbers<[1], [0], [0], [1], [0, 0, 1, 1], [], []>} : vector<2x32xf32>, vector<32x128xf32>, vector<2x128xf32> -> vector<2x128xf32>
    %82 = arith.addf %80, %81 : vector<2x128xf32>
    %83 = arith.addf %82, %9 : vector<2x128xf32>
    %84 = arith.negf %83 : vector<2x128xf32>
    %85 = math.exp %84 : vector<2x128xf32>
    %cst_31 = arith.constant 1.000000e+00 : f32
    %86 = vector.broadcast %cst_31 : f32 to vector<2x128xf32>
    %87 = arith.addf %86, %85 : vector<2x128xf32>
    %88 = arith.divf %86, %87 : vector<2x128xf32>
    %89 = math.tanh %83 : vector<2x128xf32>
    %90 = vector.extract_strided_slice %88 {offsets = [0, 0], sizes = [2, 32], strides = [1, 1]} : vector<2x128xf32> to vector<2x32xf32>
    %91 = vector.extract_strided_slice %88 {offsets = [0, 32], sizes = [2, 32], strides = [1, 1]} : vector<2x128xf32> to vector<2x32xf32>
    %92 = vector.extract_strided_slice %89 {offsets = [0, 64], sizes = [2, 32], strides = [1, 1]} : vector<2x128xf32> to vector<2x32xf32>
    %93 = vector.extract_strided_slice %88 {offsets = [0, 96], sizes = [2, 32], strides = [1, 1]} : vector<2x128xf32> to vector<2x32xf32>
    %94 = arith.mulf %91, %56 : vector<2x32xf32>
    %95 = arith.mulf %90, %92 : vector<2x32xf32>
    %96 = arith.addf %94, %95 : vector<2x32xf32>
    %97 = math.tanh %96 : vector<2x32xf32>
    %98 = arith.mulf %93, %97 : vector<2x32xf32>
    %cst_32 = arith.constant dense<0.000000e+00> : vector<2x128xf32>
    %99 = tpu.matmul %58, %3, %cst_32 {dimension_numbers = #tpu.dot_dimension_numbers<[1], [0], [0], [1], [0, 0, 1, 1], [], []>} : vector<2x32xf32>, vector<32x128xf32>, vector<2x128xf32> -> vector<2x128xf32>
    %cst_33 = arith.constant dense<0.000000e+00> : vector<2x128xf32>
    %100 = tpu.matmul %77, %4, %cst_33 {dimension_numbers = #tpu.dot_dimension_numbers<[1], [0], [0], [1], [0, 0, 1, 1], [], []>} : vector<2x32xf32>, vector<32x128xf32>, vector<2x128xf32> -> vector<2x128xf32>
    %101 = arith.addf %99, %100 : vector<2x128xf32>
    %102 = arith.addf %101, %12 : vector<2x128xf32>
    %103 = arith.negf %102 : vector<2x128xf32>
    %104 = math.exp %103 : vector<2x128xf32>
    %cst_34 = arith.constant 1.000000e+00 : f32
    %105 = vector.broadcast %cst_34 : f32 to vector<2x128xf32>
    %106 = arith.addf %105, %104 : vector<2x128xf32>
    %107 = arith.divf %105, %106 : vector<2x128xf32>
    %108 = math.tanh %102 : vector<2x128xf32>
    %109 = vector.extract_strided_slice %107 {offsets = [0, 0], sizes = [2, 32], strides = [1, 1]} : vector<2x128xf32> to vector<2x32xf32>
    %110 = vector.extract_strided_slice %107 {offsets = [0, 32], sizes = [2, 32], strides = [1, 1]} : vector<2x128xf32> to vector<2x32xf32>
    %111 = vector.extract_strided_slice %108 {offsets = [0, 64], sizes = [2, 32], strides = [1, 1]} : vector<2x128xf32> to vector<2x32xf32>
    %112 = vector.extract_strided_slice %107 {offsets = [0, 96], sizes = [2, 32], strides = [1, 1]} : vector<2x128xf32> to vector<2x32xf32>
    %113 = arith.mulf %110, %75 : vector<2x32xf32>
    %114 = arith.mulf %109, %111 : vector<2x32xf32>
    %115 = arith.addf %113, %114 : vector<2x32xf32>
    %116 = math.tanh %115 : vector<2x32xf32>
    %117 = arith.mulf %112, %116 : vector<2x32xf32>
    %cst_35 = arith.constant dense<0.000000e+00> : vector<2x128xf32>
    %118 = tpu.matmul %77, %5, %cst_35 {dimension_numbers = #tpu.dot_dimension_numbers<[1], [0], [0], [1], [0, 0, 1, 1], [], []>} : vector<2x32xf32>, vector<32x128xf32>, vector<2x128xf32> -> vector<2x128xf32>
    %cst_36 = arith.constant dense<0.000000e+00> : vector<2x128xf32>
    %119 = tpu.matmul %16, %6, %cst_36 {dimension_numbers = #tpu.dot_dimension_numbers<[1], [0], [0], [1], [0, 0, 1, 1], [], []>} : vector<2x32xf32>, vector<32x128xf32>, vector<2x128xf32> -> vector<2x128xf32>
    %120 = arith.addf %118, %119 : vector<2x128xf32>
    %121 = arith.addf %120, %15 : vector<2x128xf32>
    %122 = arith.negf %121 : vector<2x128xf32>
    %123 = math.exp %122 : vector<2x128xf32>
    %cst_37 = arith.constant 1.000000e+00 : f32
    %124 = vector.broadcast %cst_37 : f32 to vector<2x128xf32>
    %125 = arith.addf %124, %123 : vector<2x128xf32>
    %126 = arith.divf %124, %125 : vector<2x128xf32>
    %127 = math.tanh %121 : vector<2x128xf32>
    %128 = vector.extract_strided_slice %126 {offsets = [0, 0], sizes = [2, 32], strides = [1, 1]} : vector<2x128xf32> to vector<2x32xf32>
    %129 = vector.extract_strided_slice %126 {offsets = [0, 32], sizes = [2, 32], strides = [1, 1]} : vector<2x128xf32> to vector<2x32xf32>
    %130 = vector.extract_strided_slice %127 {offsets = [0, 64], sizes = [2, 32], strides = [1, 1]} : vector<2x128xf32> to vector<2x32xf32>
    %131 = vector.extract_strided_slice %126 {offsets = [0, 96], sizes = [2, 32], strides = [1, 1]} : vector<2x128xf32> to vector<2x32xf32>
    %132 = arith.mulf %129, %16 : vector<2x32xf32>
    %133 = arith.mulf %128, %130 : vector<2x32xf32>
    %134 = arith.addf %132, %133 : vector<2x32xf32>
    %135 = math.tanh %134 : vector<2x32xf32>
    %136 = arith.mulf %131, %135 : vector<2x32xf32>
    %137 = vector.extract_strided_slice %0 {offsets = [0, 3, 0], sizes = [2, 1, 4], strides = [1, 1, 1]} : vector<2x8x4xf32> to vector<2x1x4xf32>
    %138 = vector.shape_cast %137 : vector<2x1x4xf32> to vector<2x4xf32>
    %cst_38 = arith.constant dense<0.000000e+00> : vector<2x128xf32>
    %139 = tpu.matmul %138, %1, %cst_38 {dimension_numbers = #tpu.dot_dimension_numbers<[1], [0], [0], [1], [0, 0, 1, 1], [], []>} : vector<2x4xf32>, vector<4x128xf32>, vector<2x128xf32> -> vector<2x128xf32>
    %cst_39 = arith.constant dense<0.000000e+00> : vector<2x128xf32>
    %140 = tpu.matmul %98, %2, %cst_39 {dimension_numbers = #tpu.dot_dimension_numbers<[1], [0], [0], [1], [0, 0, 1, 1], [], []>} : vector<2x32xf32>, vector<32x128xf32>, vector<2x128xf32> -> vector<2x128xf32>
    %141 = arith.addf %139, %140 : vector<2x128xf32>
    %142 = arith.addf %141, %9 : vector<2x128xf32>
    %143 = arith.negf %142 : vector<2x128xf32>
    %144 = math.exp %143 : vector<2x128xf32>
    %cst_40 = arith.constant 1.000000e+00 : f32
    %145 = vector.broadcast %cst_40 : f32 to vector<2x128xf32>
    %146 = arith.addf %145, %144 : vector<2x128xf32>
    %147 = arith.divf %145, %146 : vector<2x128xf32>
    %148 = math.tanh %142 : vector<2x128xf32>
    %149 = vector.extract_strided_slice %147 {offsets = [0, 0], sizes = [2, 32], strides = [1, 1]} : vector<2x128xf32> to vector<2x32xf32>
    %150 = vector.extract_strided_slice %147 {offsets = [0, 32], sizes = [2, 32], strides = [1, 1]} : vector<2x128xf32> to vector<2x32xf32>
    %151 = vector.extract_strided_slice %148 {offsets = [0, 64], sizes = [2, 32], strides = [1, 1]} : vector<2x128xf32> to vector<2x32xf32>
    %152 = vector.extract_strided_slice %147 {offsets = [0, 96], sizes = [2, 32], strides = [1, 1]} : vector<2x128xf32> to vector<2x32xf32>
    %153 = arith.mulf %150, %96 : vector<2x32xf32>
    %154 = arith.mulf %149, %151 : vector<2x32xf32>
    %155 = arith.addf %153, %154 : vector<2x32xf32>
    %156 = math.tanh %155 : vector<2x32xf32>
    %157 = arith.mulf %152, %156 : vector<2x32xf32>
    %cst_41 = arith.constant dense<0.000000e+00> : vector<2x128xf32>
    %158 = tpu.matmul %98, %3, %cst_41 {dimension_numbers = #tpu.dot_dimension_numbers<[1], [0], [0], [1], [0, 0, 1, 1], [], []>} : vector<2x32xf32>, vector<32x128xf32>, vector<2x128xf32> -> vector<2x128xf32>
    %cst_42 = arith.constant dense<0.000000e+00> : vector<2x128xf32>
    %159 = tpu.matmul %117, %4, %cst_42 {dimension_numbers = #tpu.dot_dimension_numbers<[1], [0], [0], [1], [0, 0, 1, 1], [], []>} : vector<2x32xf32>, vector<32x128xf32>, vector<2x128xf32> -> vector<2x128xf32>
    %160 = arith.addf %158, %159 : vector<2x128xf32>
    %161 = arith.addf %160, %12 : vector<2x128xf32>
    %162 = arith.negf %161 : vector<2x128xf32>
    %163 = math.exp %162 : vector<2x128xf32>
    %cst_43 = arith.constant 1.000000e+00 : f32
    %164 = vector.broadcast %cst_43 : f32 to vector<2x128xf32>
    %165 = arith.addf %164, %163 : vector<2x128xf32>
    %166 = arith.divf %164, %165 : vector<2x128xf32>
    %167 = math.tanh %161 : vector<2x128xf32>
    %168 = vector.extract_strided_slice %166 {offsets = [0, 0], sizes = [2, 32], strides = [1, 1]} : vector<2x128xf32> to vector<2x32xf32>
    %169 = vector.extract_strided_slice %166 {offsets = [0, 32], sizes = [2, 32], strides = [1, 1]} : vector<2x128xf32> to vector<2x32xf32>
    %170 = vector.extract_strided_slice %167 {offsets = [0, 64], sizes = [2, 32], strides = [1, 1]} : vector<2x128xf32> to vector<2x32xf32>
    %171 = vector.extract_strided_slice %166 {offsets = [0, 96], sizes = [2, 32], strides = [1, 1]} : vector<2x128xf32> to vector<2x32xf32>
    %172 = arith.mulf %169, %115 : vector<2x32xf32>
    %173 = arith.mulf %168, %170 : vector<2x32xf32>
    %174 = arith.addf %172, %173 : vector<2x32xf32>
    %175 = math.tanh %174 : vector<2x32xf32>
    %176 = arith.mulf %171, %175 : vector<2x32xf32>
    %cst_44 = arith.constant dense<0.000000e+00> : vector<2x128xf32>
    %177 = tpu.matmul %117, %5, %cst_44 {dimension_numbers = #tpu.dot_dimension_numbers<[1], [0], [0], [1], [0, 0, 1, 1], [], []>} : vector<2x32xf32>, vector<32x128xf32>, vector<2x128xf32> -> vector<2x128xf32>
    %cst_45 = arith.constant dense<0.000000e+00> : vector<2x128xf32>
    %178 = tpu.matmul %136, %6, %cst_45 {dimension_numbers = #tpu.dot_dimension_numbers<[1], [0], [0], [1], [0, 0, 1, 1], [], []>} : vector<2x32xf32>, vector<32x128xf32>, vector<2x128xf32> -> vector<2x128xf32>
    %179 = arith.addf %177, %178 : vector<2x128xf32>
    %180 = arith.addf %179, %15 : vector<2x128xf32>
    %181 = arith.negf %180 : vector<2x128xf32>
    %182 = math.exp %181 : vector<2x128xf32>
    %cst_46 = arith.constant 1.000000e+00 : f32
    %183 = vector.broadcast %cst_46 : f32 to vector<2x128xf32>
    %184 = arith.addf %183, %182 : vector<2x128xf32>
    %185 = arith.divf %183, %184 : vector<2x128xf32>
    %186 = math.tanh %180 : vector<2x128xf32>
    %187 = vector.extract_strided_slice %185 {offsets = [0, 0], sizes = [2, 32], strides = [1, 1]} : vector<2x128xf32> to vector<2x32xf32>
    %188 = vector.extract_strided_slice %185 {offsets = [0, 32], sizes = [2, 32], strides = [1, 1]} : vector<2x128xf32> to vector<2x32xf32>
    %189 = vector.extract_strided_slice %186 {offsets = [0, 64], sizes = [2, 32], strides = [1, 1]} : vector<2x128xf32> to vector<2x32xf32>
    %190 = vector.extract_strided_slice %185 {offsets = [0, 96], sizes = [2, 32], strides = [1, 1]} : vector<2x128xf32> to vector<2x32xf32>
    %191 = arith.mulf %188, %134 : vector<2x32xf32>
    %192 = arith.mulf %187, %189 : vector<2x32xf32>
    %193 = arith.addf %191, %192 : vector<2x32xf32>
    %194 = math.tanh %193 : vector<2x32xf32>
    %195 = arith.mulf %190, %194 : vector<2x32xf32>
    %196 = vector.extract_strided_slice %0 {offsets = [0, 4, 0], sizes = [2, 1, 4], strides = [1, 1, 1]} : vector<2x8x4xf32> to vector<2x1x4xf32>
    %197 = vector.shape_cast %196 : vector<2x1x4xf32> to vector<2x4xf32>
    %cst_47 = arith.constant dense<0.000000e+00> : vector<2x128xf32>
    %198 = tpu.matmul %197, %1, %cst_47 {dimension_numbers = #tpu.dot_dimension_numbers<[1], [0], [0], [1], [0, 0, 1, 1], [], []>} : vector<2x4xf32>, vector<4x128xf32>, vector<2x128xf32> -> vector<2x128xf32>
    %cst_48 = arith.constant dense<0.000000e+00> : vector<2x128xf32>
    %199 = tpu.matmul %157, %2, %cst_48 {dimension_numbers = #tpu.dot_dimension_numbers<[1], [0], [0], [1], [0, 0, 1, 1], [], []>} : vector<2x32xf32>, vector<32x128xf32>, vector<2x128xf32> -> vector<2x128xf32>
    %200 = arith.addf %198, %199 : vector<2x128xf32>
    %201 = arith.addf %200, %9 : vector<2x128xf32>
    %202 = arith.negf %201 : vector<2x128xf32>
    %203 = math.exp %202 : vector<2x128xf32>
    %cst_49 = arith.constant 1.000000e+00 : f32
    %204 = vector.broadcast %cst_49 : f32 to vector<2x128xf32>
    %205 = arith.addf %204, %203 : vector<2x128xf32>
    %206 = arith.divf %204, %205 : vector<2x128xf32>
    %207 = math.tanh %201 : vector<2x128xf32>
    %208 = vector.extract_strided_slice %206 {offsets = [0, 0], sizes = [2, 32], strides = [1, 1]} : vector<2x128xf32> to vector<2x32xf32>
    %209 = vector.extract_strided_slice %206 {offsets = [0, 32], sizes = [2, 32], strides = [1, 1]} : vector<2x128xf32> to vector<2x32xf32>
    %210 = vector.extract_strided_slice %207 {offsets = [0, 64], sizes = [2, 32], strides = [1, 1]} : vector<2x128xf32> to vector<2x32xf32>
    %211 = vector.extract_strided_slice %206 {offsets = [0, 96], sizes = [2, 32], strides = [1, 1]} : vector<2x128xf32> to vector<2x32xf32>
    %212 = arith.mulf %209, %155 : vector<2x32xf32>
    %213 = arith.mulf %208, %210 : vector<2x32xf32>
    %214 = arith.addf %212, %213 : vector<2x32xf32>
    %215 = math.tanh %214 : vector<2x32xf32>
    %216 = arith.mulf %211, %215 : vector<2x32xf32>
    %cst_50 = arith.constant dense<0.000000e+00> : vector<2x128xf32>
    %217 = tpu.matmul %157, %3, %cst_50 {dimension_numbers = #tpu.dot_dimension_numbers<[1], [0], [0], [1], [0, 0, 1, 1], [], []>} : vector<2x32xf32>, vector<32x128xf32>, vector<2x128xf32> -> vector<2x128xf32>
    %cst_51 = arith.constant dense<0.000000e+00> : vector<2x128xf32>
    %218 = tpu.matmul %176, %4, %cst_51 {dimension_numbers = #tpu.dot_dimension_numbers<[1], [0], [0], [1], [0, 0, 1, 1], [], []>} : vector<2x32xf32>, vector<32x128xf32>, vector<2x128xf32> -> vector<2x128xf32>
    %219 = arith.addf %217, %218 : vector<2x128xf32>
    %220 = arith.addf %219, %12 : vector<2x128xf32>
    %221 = arith.negf %220 : vector<2x128xf32>
    %222 = math.exp %221 : vector<2x128xf32>
    %cst_52 = arith.constant 1.000000e+00 : f32
    %223 = vector.broadcast %cst_52 : f32 to vector<2x128xf32>
    %224 = arith.addf %223, %222 : vector<2x128xf32>
    %225 = arith.divf %223, %224 : vector<2x128xf32>
    %226 = math.tanh %220 : vector<2x128xf32>
    %227 = vector.extract_strided_slice %225 {offsets = [0, 0], sizes = [2, 32], strides = [1, 1]} : vector<2x128xf32> to vector<2x32xf32>
    %228 = vector.extract_strided_slice %225 {offsets = [0, 32], sizes = [2, 32], strides = [1, 1]} : vector<2x128xf32> to vector<2x32xf32>
    %229 = vector.extract_strided_slice %226 {offsets = [0, 64], sizes = [2, 32], strides = [1, 1]} : vector<2x128xf32> to vector<2x32xf32>
    %230 = vector.extract_strided_slice %225 {offsets = [0, 96], sizes = [2, 32], strides = [1, 1]} : vector<2x128xf32> to vector<2x32xf32>
    %231 = arith.mulf %228, %174 : vector<2x32xf32>
    %232 = arith.mulf %227, %229 : vector<2x32xf32>
    %233 = arith.addf %231, %232 : vector<2x32xf32>
    %234 = math.tanh %233 : vector<2x32xf32>
    %235 = arith.mulf %230, %234 : vector<2x32xf32>
    %cst_53 = arith.constant dense<0.000000e+00> : vector<2x128xf32>
    %236 = tpu.matmul %176, %5, %cst_53 {dimension_numbers = #tpu.dot_dimension_numbers<[1], [0], [0], [1], [0, 0, 1, 1], [], []>} : vector<2x32xf32>, vector<32x128xf32>, vector<2x128xf32> -> vector<2x128xf32>
    %cst_54 = arith.constant dense<0.000000e+00> : vector<2x128xf32>
    %237 = tpu.matmul %195, %6, %cst_54 {dimension_numbers = #tpu.dot_dimension_numbers<[1], [0], [0], [1], [0, 0, 1, 1], [], []>} : vector<2x32xf32>, vector<32x128xf32>, vector<2x128xf32> -> vector<2x128xf32>
    %238 = arith.addf %236, %237 : vector<2x128xf32>
    %239 = arith.addf %238, %15 : vector<2x128xf32>
    %240 = arith.negf %239 : vector<2x128xf32>
    %241 = math.exp %240 : vector<2x128xf32>
    %cst_55 = arith.constant 1.000000e+00 : f32
    %242 = vector.broadcast %cst_55 : f32 to vector<2x128xf32>
    %243 = arith.addf %242, %241 : vector<2x128xf32>
    %244 = arith.divf %242, %243 : vector<2x128xf32>
    %245 = math.tanh %239 : vector<2x128xf32>
    %246 = vector.extract_strided_slice %244 {offsets = [0, 0], sizes = [2, 32], strides = [1, 1]} : vector<2x128xf32> to vector<2x32xf32>
    %247 = vector.extract_strided_slice %244 {offsets = [0, 32], sizes = [2, 32], strides = [1, 1]} : vector<2x128xf32> to vector<2x32xf32>
    %248 = vector.extract_strided_slice %245 {offsets = [0, 64], sizes = [2, 32], strides = [1, 1]} : vector<2x128xf32> to vector<2x32xf32>
    %249 = vector.extract_strided_slice %244 {offsets = [0, 96], sizes = [2, 32], strides = [1, 1]} : vector<2x128xf32> to vector<2x32xf32>
    %250 = arith.mulf %247, %193 : vector<2x32xf32>
    %251 = arith.mulf %246, %248 : vector<2x32xf32>
    %252 = arith.addf %250, %251 : vector<2x32xf32>
    %253 = math.tanh %252 : vector<2x32xf32>
    %254 = arith.mulf %249, %253 : vector<2x32xf32>
    %255 = vector.extract_strided_slice %0 {offsets = [0, 5, 0], sizes = [2, 1, 4], strides = [1, 1, 1]} : vector<2x8x4xf32> to vector<2x1x4xf32>
    %256 = vector.shape_cast %255 : vector<2x1x4xf32> to vector<2x4xf32>
    %cst_56 = arith.constant dense<0.000000e+00> : vector<2x128xf32>
    %257 = tpu.matmul %256, %1, %cst_56 {dimension_numbers = #tpu.dot_dimension_numbers<[1], [0], [0], [1], [0, 0, 1, 1], [], []>} : vector<2x4xf32>, vector<4x128xf32>, vector<2x128xf32> -> vector<2x128xf32>
    %cst_57 = arith.constant dense<0.000000e+00> : vector<2x128xf32>
    %258 = tpu.matmul %216, %2, %cst_57 {dimension_numbers = #tpu.dot_dimension_numbers<[1], [0], [0], [1], [0, 0, 1, 1], [], []>} : vector<2x32xf32>, vector<32x128xf32>, vector<2x128xf32> -> vector<2x128xf32>
    %259 = arith.addf %257, %258 : vector<2x128xf32>
    %260 = arith.addf %259, %9 : vector<2x128xf32>
    %261 = arith.negf %260 : vector<2x128xf32>
    %262 = math.exp %261 : vector<2x128xf32>
    %cst_58 = arith.constant 1.000000e+00 : f32
    %263 = vector.broadcast %cst_58 : f32 to vector<2x128xf32>
    %264 = arith.addf %263, %262 : vector<2x128xf32>
    %265 = arith.divf %263, %264 : vector<2x128xf32>
    %266 = math.tanh %260 : vector<2x128xf32>
    %267 = vector.extract_strided_slice %265 {offsets = [0, 0], sizes = [2, 32], strides = [1, 1]} : vector<2x128xf32> to vector<2x32xf32>
    %268 = vector.extract_strided_slice %265 {offsets = [0, 32], sizes = [2, 32], strides = [1, 1]} : vector<2x128xf32> to vector<2x32xf32>
    %269 = vector.extract_strided_slice %266 {offsets = [0, 64], sizes = [2, 32], strides = [1, 1]} : vector<2x128xf32> to vector<2x32xf32>
    %270 = vector.extract_strided_slice %265 {offsets = [0, 96], sizes = [2, 32], strides = [1, 1]} : vector<2x128xf32> to vector<2x32xf32>
    %271 = arith.mulf %268, %214 : vector<2x32xf32>
    %272 = arith.mulf %267, %269 : vector<2x32xf32>
    %273 = arith.addf %271, %272 : vector<2x32xf32>
    %274 = math.tanh %273 : vector<2x32xf32>
    %275 = arith.mulf %270, %274 : vector<2x32xf32>
    %cst_59 = arith.constant dense<0.000000e+00> : vector<2x128xf32>
    %276 = tpu.matmul %216, %3, %cst_59 {dimension_numbers = #tpu.dot_dimension_numbers<[1], [0], [0], [1], [0, 0, 1, 1], [], []>} : vector<2x32xf32>, vector<32x128xf32>, vector<2x128xf32> -> vector<2x128xf32>
    %cst_60 = arith.constant dense<0.000000e+00> : vector<2x128xf32>
    %277 = tpu.matmul %235, %4, %cst_60 {dimension_numbers = #tpu.dot_dimension_numbers<[1], [0], [0], [1], [0, 0, 1, 1], [], []>} : vector<2x32xf32>, vector<32x128xf32>, vector<2x128xf32> -> vector<2x128xf32>
    %278 = arith.addf %276, %277 : vector<2x128xf32>
    %279 = arith.addf %278, %12 : vector<2x128xf32>
    %280 = arith.negf %279 : vector<2x128xf32>
    %281 = math.exp %280 : vector<2x128xf32>
    %cst_61 = arith.constant 1.000000e+00 : f32
    %282 = vector.broadcast %cst_61 : f32 to vector<2x128xf32>
    %283 = arith.addf %282, %281 : vector<2x128xf32>
    %284 = arith.divf %282, %283 : vector<2x128xf32>
    %285 = math.tanh %279 : vector<2x128xf32>
    %286 = vector.extract_strided_slice %284 {offsets = [0, 0], sizes = [2, 32], strides = [1, 1]} : vector<2x128xf32> to vector<2x32xf32>
    %287 = vector.extract_strided_slice %284 {offsets = [0, 32], sizes = [2, 32], strides = [1, 1]} : vector<2x128xf32> to vector<2x32xf32>
    %288 = vector.extract_strided_slice %285 {offsets = [0, 64], sizes = [2, 32], strides = [1, 1]} : vector<2x128xf32> to vector<2x32xf32>
    %289 = vector.extract_strided_slice %284 {offsets = [0, 96], sizes = [2, 32], strides = [1, 1]} : vector<2x128xf32> to vector<2x32xf32>
    %290 = arith.mulf %287, %233 : vector<2x32xf32>
    %291 = arith.mulf %286, %288 : vector<2x32xf32>
    %292 = arith.addf %290, %291 : vector<2x32xf32>
    %293 = math.tanh %292 : vector<2x32xf32>
    %294 = arith.mulf %289, %293 : vector<2x32xf32>
    %cst_62 = arith.constant dense<0.000000e+00> : vector<2x128xf32>
    %295 = tpu.matmul %235, %5, %cst_62 {dimension_numbers = #tpu.dot_dimension_numbers<[1], [0], [0], [1], [0, 0, 1, 1], [], []>} : vector<2x32xf32>, vector<32x128xf32>, vector<2x128xf32> -> vector<2x128xf32>
    %cst_63 = arith.constant dense<0.000000e+00> : vector<2x128xf32>
    %296 = tpu.matmul %254, %6, %cst_63 {dimension_numbers = #tpu.dot_dimension_numbers<[1], [0], [0], [1], [0, 0, 1, 1], [], []>} : vector<2x32xf32>, vector<32x128xf32>, vector<2x128xf32> -> vector<2x128xf32>
    %297 = arith.addf %295, %296 : vector<2x128xf32>
    %298 = arith.addf %297, %15 : vector<2x128xf32>
    %299 = arith.negf %298 : vector<2x128xf32>
    %300 = math.exp %299 : vector<2x128xf32>
    %cst_64 = arith.constant 1.000000e+00 : f32
    %301 = vector.broadcast %cst_64 : f32 to vector<2x128xf32>
    %302 = arith.addf %301, %300 : vector<2x128xf32>
    %303 = arith.divf %301, %302 : vector<2x128xf32>
    %304 = math.tanh %298 : vector<2x128xf32>
    %305 = vector.extract_strided_slice %303 {offsets = [0, 0], sizes = [2, 32], strides = [1, 1]} : vector<2x128xf32> to vector<2x32xf32>
    %306 = vector.extract_strided_slice %303 {offsets = [0, 32], sizes = [2, 32], strides = [1, 1]} : vector<2x128xf32> to vector<2x32xf32>
    %307 = vector.extract_strided_slice %304 {offsets = [0, 64], sizes = [2, 32], strides = [1, 1]} : vector<2x128xf32> to vector<2x32xf32>
    %308 = vector.extract_strided_slice %303 {offsets = [0, 96], sizes = [2, 32], strides = [1, 1]} : vector<2x128xf32> to vector<2x32xf32>
    %309 = arith.mulf %306, %252 : vector<2x32xf32>
    %310 = arith.mulf %305, %307 : vector<2x32xf32>
    %311 = arith.addf %309, %310 : vector<2x32xf32>
    %312 = math.tanh %311 : vector<2x32xf32>
    %313 = arith.mulf %308, %312 : vector<2x32xf32>
    %314 = vector.extract_strided_slice %0 {offsets = [0, 6, 0], sizes = [2, 1, 4], strides = [1, 1, 1]} : vector<2x8x4xf32> to vector<2x1x4xf32>
    %315 = vector.shape_cast %314 : vector<2x1x4xf32> to vector<2x4xf32>
    %cst_65 = arith.constant dense<0.000000e+00> : vector<2x128xf32>
    %316 = tpu.matmul %315, %1, %cst_65 {dimension_numbers = #tpu.dot_dimension_numbers<[1], [0], [0], [1], [0, 0, 1, 1], [], []>} : vector<2x4xf32>, vector<4x128xf32>, vector<2x128xf32> -> vector<2x128xf32>
    %cst_66 = arith.constant dense<0.000000e+00> : vector<2x128xf32>
    %317 = tpu.matmul %275, %2, %cst_66 {dimension_numbers = #tpu.dot_dimension_numbers<[1], [0], [0], [1], [0, 0, 1, 1], [], []>} : vector<2x32xf32>, vector<32x128xf32>, vector<2x128xf32> -> vector<2x128xf32>
    %318 = arith.addf %316, %317 : vector<2x128xf32>
    %319 = arith.addf %318, %9 : vector<2x128xf32>
    %320 = arith.negf %319 : vector<2x128xf32>
    %321 = math.exp %320 : vector<2x128xf32>
    %cst_67 = arith.constant 1.000000e+00 : f32
    %322 = vector.broadcast %cst_67 : f32 to vector<2x128xf32>
    %323 = arith.addf %322, %321 : vector<2x128xf32>
    %324 = arith.divf %322, %323 : vector<2x128xf32>
    %325 = math.tanh %319 : vector<2x128xf32>
    %326 = vector.extract_strided_slice %324 {offsets = [0, 0], sizes = [2, 32], strides = [1, 1]} : vector<2x128xf32> to vector<2x32xf32>
    %327 = vector.extract_strided_slice %324 {offsets = [0, 32], sizes = [2, 32], strides = [1, 1]} : vector<2x128xf32> to vector<2x32xf32>
    %328 = vector.extract_strided_slice %325 {offsets = [0, 64], sizes = [2, 32], strides = [1, 1]} : vector<2x128xf32> to vector<2x32xf32>
    %329 = vector.extract_strided_slice %324 {offsets = [0, 96], sizes = [2, 32], strides = [1, 1]} : vector<2x128xf32> to vector<2x32xf32>
    %330 = arith.mulf %327, %273 : vector<2x32xf32>
    %331 = arith.mulf %326, %328 : vector<2x32xf32>
    %332 = arith.addf %330, %331 : vector<2x32xf32>
    %333 = math.tanh %332 : vector<2x32xf32>
    %334 = arith.mulf %329, %333 : vector<2x32xf32>
    %cst_68 = arith.constant dense<0.000000e+00> : vector<2x128xf32>
    %335 = tpu.matmul %275, %3, %cst_68 {dimension_numbers = #tpu.dot_dimension_numbers<[1], [0], [0], [1], [0, 0, 1, 1], [], []>} : vector<2x32xf32>, vector<32x128xf32>, vector<2x128xf32> -> vector<2x128xf32>
    %cst_69 = arith.constant dense<0.000000e+00> : vector<2x128xf32>
    %336 = tpu.matmul %294, %4, %cst_69 {dimension_numbers = #tpu.dot_dimension_numbers<[1], [0], [0], [1], [0, 0, 1, 1], [], []>} : vector<2x32xf32>, vector<32x128xf32>, vector<2x128xf32> -> vector<2x128xf32>
    %337 = arith.addf %335, %336 : vector<2x128xf32>
    %338 = arith.addf %337, %12 : vector<2x128xf32>
    %339 = arith.negf %338 : vector<2x128xf32>
    %340 = math.exp %339 : vector<2x128xf32>
    %cst_70 = arith.constant 1.000000e+00 : f32
    %341 = vector.broadcast %cst_70 : f32 to vector<2x128xf32>
    %342 = arith.addf %341, %340 : vector<2x128xf32>
    %343 = arith.divf %341, %342 : vector<2x128xf32>
    %344 = math.tanh %338 : vector<2x128xf32>
    %345 = vector.extract_strided_slice %343 {offsets = [0, 0], sizes = [2, 32], strides = [1, 1]} : vector<2x128xf32> to vector<2x32xf32>
    %346 = vector.extract_strided_slice %343 {offsets = [0, 32], sizes = [2, 32], strides = [1, 1]} : vector<2x128xf32> to vector<2x32xf32>
    %347 = vector.extract_strided_slice %344 {offsets = [0, 64], sizes = [2, 32], strides = [1, 1]} : vector<2x128xf32> to vector<2x32xf32>
    %348 = vector.extract_strided_slice %343 {offsets = [0, 96], sizes = [2, 32], strides = [1, 1]} : vector<2x128xf32> to vector<2x32xf32>
    %349 = arith.mulf %346, %292 : vector<2x32xf32>
    %350 = arith.mulf %345, %347 : vector<2x32xf32>
    %351 = arith.addf %349, %350 : vector<2x32xf32>
    %352 = math.tanh %351 : vector<2x32xf32>
    %353 = arith.mulf %348, %352 : vector<2x32xf32>
    %cst_71 = arith.constant dense<0.000000e+00> : vector<2x128xf32>
    %354 = tpu.matmul %294, %5, %cst_71 {dimension_numbers = #tpu.dot_dimension_numbers<[1], [0], [0], [1], [0, 0, 1, 1], [], []>} : vector<2x32xf32>, vector<32x128xf32>, vector<2x128xf32> -> vector<2x128xf32>
    %cst_72 = arith.constant dense<0.000000e+00> : vector<2x128xf32>
    %355 = tpu.matmul %313, %6, %cst_72 {dimension_numbers = #tpu.dot_dimension_numbers<[1], [0], [0], [1], [0, 0, 1, 1], [], []>} : vector<2x32xf32>, vector<32x128xf32>, vector<2x128xf32> -> vector<2x128xf32>
    %356 = arith.addf %354, %355 : vector<2x128xf32>
    %357 = arith.addf %356, %15 : vector<2x128xf32>
    %358 = arith.negf %357 : vector<2x128xf32>
    %359 = math.exp %358 : vector<2x128xf32>
    %cst_73 = arith.constant 1.000000e+00 : f32
    %360 = vector.broadcast %cst_73 : f32 to vector<2x128xf32>
    %361 = arith.addf %360, %359 : vector<2x128xf32>
    %362 = arith.divf %360, %361 : vector<2x128xf32>
    %363 = math.tanh %357 : vector<2x128xf32>
    %364 = vector.extract_strided_slice %362 {offsets = [0, 0], sizes = [2, 32], strides = [1, 1]} : vector<2x128xf32> to vector<2x32xf32>
    %365 = vector.extract_strided_slice %362 {offsets = [0, 32], sizes = [2, 32], strides = [1, 1]} : vector<2x128xf32> to vector<2x32xf32>
    %366 = vector.extract_strided_slice %363 {offsets = [0, 64], sizes = [2, 32], strides = [1, 1]} : vector<2x128xf32> to vector<2x32xf32>
    %367 = vector.extract_strided_slice %362 {offsets = [0, 96], sizes = [2, 32], strides = [1, 1]} : vector<2x128xf32> to vector<2x32xf32>
    %368 = arith.mulf %365, %311 : vector<2x32xf32>
    %369 = arith.mulf %364, %366 : vector<2x32xf32>
    %370 = arith.addf %368, %369 : vector<2x32xf32>
    %371 = math.tanh %370 : vector<2x32xf32>
    %372 = arith.mulf %367, %371 : vector<2x32xf32>
    %373 = vector.extract_strided_slice %0 {offsets = [0, 7, 0], sizes = [2, 1, 4], strides = [1, 1, 1]} : vector<2x8x4xf32> to vector<2x1x4xf32>
    %374 = vector.shape_cast %373 : vector<2x1x4xf32> to vector<2x4xf32>
    %cst_74 = arith.constant dense<0.000000e+00> : vector<2x128xf32>
    %375 = tpu.matmul %374, %1, %cst_74 {dimension_numbers = #tpu.dot_dimension_numbers<[1], [0], [0], [1], [0, 0, 1, 1], [], []>} : vector<2x4xf32>, vector<4x128xf32>, vector<2x128xf32> -> vector<2x128xf32>
    %cst_75 = arith.constant dense<0.000000e+00> : vector<2x128xf32>
    %376 = tpu.matmul %334, %2, %cst_75 {dimension_numbers = #tpu.dot_dimension_numbers<[1], [0], [0], [1], [0, 0, 1, 1], [], []>} : vector<2x32xf32>, vector<32x128xf32>, vector<2x128xf32> -> vector<2x128xf32>
    %377 = arith.addf %375, %376 : vector<2x128xf32>
    %378 = arith.addf %377, %9 : vector<2x128xf32>
    %379 = arith.negf %378 : vector<2x128xf32>
    %380 = math.exp %379 : vector<2x128xf32>
    %cst_76 = arith.constant 1.000000e+00 : f32
    %381 = vector.broadcast %cst_76 : f32 to vector<2x128xf32>
    %382 = arith.addf %381, %380 : vector<2x128xf32>
    %383 = arith.divf %381, %382 : vector<2x128xf32>
    %384 = math.tanh %378 : vector<2x128xf32>
    %385 = vector.extract_strided_slice %383 {offsets = [0, 0], sizes = [2, 32], strides = [1, 1]} : vector<2x128xf32> to vector<2x32xf32>
    %386 = vector.extract_strided_slice %383 {offsets = [0, 32], sizes = [2, 32], strides = [1, 1]} : vector<2x128xf32> to vector<2x32xf32>
    %387 = vector.extract_strided_slice %384 {offsets = [0, 64], sizes = [2, 32], strides = [1, 1]} : vector<2x128xf32> to vector<2x32xf32>
    %388 = vector.extract_strided_slice %383 {offsets = [0, 96], sizes = [2, 32], strides = [1, 1]} : vector<2x128xf32> to vector<2x32xf32>
    %389 = arith.mulf %386, %332 : vector<2x32xf32>
    %390 = arith.mulf %385, %387 : vector<2x32xf32>
    %391 = arith.addf %389, %390 : vector<2x32xf32>
    %392 = math.tanh %391 : vector<2x32xf32>
    %393 = arith.mulf %388, %392 : vector<2x32xf32>
    %cst_77 = arith.constant dense<0.000000e+00> : vector<2x128xf32>
    %394 = tpu.matmul %334, %3, %cst_77 {dimension_numbers = #tpu.dot_dimension_numbers<[1], [0], [0], [1], [0, 0, 1, 1], [], []>} : vector<2x32xf32>, vector<32x128xf32>, vector<2x128xf32> -> vector<2x128xf32>
    %cst_78 = arith.constant dense<0.000000e+00> : vector<2x128xf32>
    %395 = tpu.matmul %353, %4, %cst_78 {dimension_numbers = #tpu.dot_dimension_numbers<[1], [0], [0], [1], [0, 0, 1, 1], [], []>} : vector<2x32xf32>, vector<32x128xf32>, vector<2x128xf32> -> vector<2x128xf32>
    %396 = arith.addf %394, %395 : vector<2x128xf32>
    %397 = arith.addf %396, %12 : vector<2x128xf32>
    %398 = arith.negf %397 : vector<2x128xf32>
    %399 = math.exp %398 : vector<2x128xf32>
    %cst_79 = arith.constant 1.000000e+00 : f32
    %400 = vector.broadcast %cst_79 : f32 to vector<2x128xf32>
    %401 = arith.addf %400, %399 : vector<2x128xf32>
    %402 = arith.divf %400, %401 : vector<2x128xf32>
    %403 = math.tanh %397 : vector<2x128xf32>
    %404 = vector.extract_strided_slice %402 {offsets = [0, 0], sizes = [2, 32], strides = [1, 1]} : vector<2x128xf32> to vector<2x32xf32>
    %405 = vector.extract_strided_slice %402 {offsets = [0, 32], sizes = [2, 32], strides = [1, 1]} : vector<2x128xf32> to vector<2x32xf32>
    %406 = vector.extract_strided_slice %403 {offsets = [0, 64], sizes = [2, 32], strides = [1, 1]} : vector<2x128xf32> to vector<2x32xf32>
    %407 = vector.extract_strided_slice %402 {offsets = [0, 96], sizes = [2, 32], strides = [1, 1]} : vector<2x128xf32> to vector<2x32xf32>
    %408 = arith.mulf %405, %351 : vector<2x32xf32>
    %409 = arith.mulf %404, %406 : vector<2x32xf32>
    %410 = arith.addf %408, %409 : vector<2x32xf32>
    %411 = math.tanh %410 : vector<2x32xf32>
    %412 = arith.mulf %407, %411 : vector<2x32xf32>
    %cst_80 = arith.constant dense<0.000000e+00> : vector<2x128xf32>
    %413 = tpu.matmul %353, %5, %cst_80 {dimension_numbers = #tpu.dot_dimension_numbers<[1], [0], [0], [1], [0, 0, 1, 1], [], []>} : vector<2x32xf32>, vector<32x128xf32>, vector<2x128xf32> -> vector<2x128xf32>
    %cst_81 = arith.constant dense<0.000000e+00> : vector<2x128xf32>
    %414 = tpu.matmul %372, %6, %cst_81 {dimension_numbers = #tpu.dot_dimension_numbers<[1], [0], [0], [1], [0, 0, 1, 1], [], []>} : vector<2x32xf32>, vector<32x128xf32>, vector<2x128xf32> -> vector<2x128xf32>
    %415 = arith.addf %413, %414 : vector<2x128xf32>
    %416 = arith.addf %415, %15 : vector<2x128xf32>
    %417 = arith.negf %416 : vector<2x128xf32>
    %418 = math.exp %417 : vector<2x128xf32>
    %cst_82 = arith.constant 1.000000e+00 : f32
    %419 = vector.broadcast %cst_82 : f32 to vector<2x128xf32>
    %420 = arith.addf %419, %418 : vector<2x128xf32>
    %421 = arith.divf %419, %420 : vector<2x128xf32>
    %422 = math.tanh %416 : vector<2x128xf32>
    %423 = vector.extract_strided_slice %421 {offsets = [0, 0], sizes = [2, 32], strides = [1, 1]} : vector<2x128xf32> to vector<2x32xf32>
    %424 = vector.extract_strided_slice %421 {offsets = [0, 32], sizes = [2, 32], strides = [1, 1]} : vector<2x128xf32> to vector<2x32xf32>
    %425 = vector.extract_strided_slice %422 {offsets = [0, 64], sizes = [2, 32], strides = [1, 1]} : vector<2x128xf32> to vector<2x32xf32>
    %426 = vector.extract_strided_slice %421 {offsets = [0, 96], sizes = [2, 32], strides = [1, 1]} : vector<2x128xf32> to vector<2x32xf32>
    %427 = arith.mulf %424, %370 : vector<2x32xf32>
    %428 = arith.mulf %423, %425 : vector<2x32xf32>
    %429 = arith.addf %427, %428 : vector<2x32xf32>
    %430 = math.tanh %429 : vector<2x32xf32>
    %431 = arith.mulf %426, %430 : vector<2x32xf32>
    %cst_83 = arith.constant dense<0.000000e+00> : vector<2x128xf32>
    %432 = tpu.matmul %393, %3, %cst_83 {dimension_numbers = #tpu.dot_dimension_numbers<[1], [0], [0], [1], [0, 0, 1, 1], [], []>} : vector<2x32xf32>, vector<32x128xf32>, vector<2x128xf32> -> vector<2x128xf32>
    %cst_84 = arith.constant dense<0.000000e+00> : vector<2x128xf32>
    %433 = tpu.matmul %412, %4, %cst_84 {dimension_numbers = #tpu.dot_dimension_numbers<[1], [0], [0], [1], [0, 0, 1, 1], [], []>} : vector<2x32xf32>, vector<32x128xf32>, vector<2x128xf32> -> vector<2x128xf32>
    %434 = arith.addf %432, %433 : vector<2x128xf32>
    %435 = arith.addf %434, %12 : vector<2x128xf32>
    %436 = arith.negf %435 : vector<2x128xf32>
    %437 = math.exp %436 : vector<2x128xf32>
    %cst_85 = arith.constant 1.000000e+00 : f32
    %438 = vector.broadcast %cst_85 : f32 to vector<2x128xf32>
    %439 = arith.addf %438, %437 : vector<2x128xf32>
    %440 = arith.divf %438, %439 : vector<2x128xf32>
    %441 = math.tanh %435 : vector<2x128xf32>
    %442 = vector.extract_strided_slice %440 {offsets = [0, 0], sizes = [2, 32], strides = [1, 1]} : vector<2x128xf32> to vector<2x32xf32>
    %443 = vector.extract_strided_slice %440 {offsets = [0, 32], sizes = [2, 32], strides = [1, 1]} : vector<2x128xf32> to vector<2x32xf32>
    %444 = vector.extract_strided_slice %441 {offsets = [0, 64], sizes = [2, 32], strides = [1, 1]} : vector<2x128xf32> to vector<2x32xf32>
    %445 = vector.extract_strided_slice %440 {offsets = [0, 96], sizes = [2, 32], strides = [1, 1]} : vector<2x128xf32> to vector<2x32xf32>
    %446 = arith.mulf %443, %410 : vector<2x32xf32>
    %447 = arith.mulf %442, %444 : vector<2x32xf32>
    %448 = arith.addf %446, %447 : vector<2x32xf32>
    %449 = math.tanh %448 : vector<2x32xf32>
    %450 = arith.mulf %445, %449 : vector<2x32xf32>
    %cst_86 = arith.constant dense<0.000000e+00> : vector<2x128xf32>
    %451 = tpu.matmul %412, %5, %cst_86 {dimension_numbers = #tpu.dot_dimension_numbers<[1], [0], [0], [1], [0, 0, 1, 1], [], []>} : vector<2x32xf32>, vector<32x128xf32>, vector<2x128xf32> -> vector<2x128xf32>
    %cst_87 = arith.constant dense<0.000000e+00> : vector<2x128xf32>
    %452 = tpu.matmul %431, %6, %cst_87 {dimension_numbers = #tpu.dot_dimension_numbers<[1], [0], [0], [1], [0, 0, 1, 1], [], []>} : vector<2x32xf32>, vector<32x128xf32>, vector<2x128xf32> -> vector<2x128xf32>
    %453 = arith.addf %451, %452 : vector<2x128xf32>
    %454 = arith.addf %453, %15 : vector<2x128xf32>
    %455 = arith.negf %454 : vector<2x128xf32>
    %456 = math.exp %455 : vector<2x128xf32>
    %cst_88 = arith.constant 1.000000e+00 : f32
    %457 = vector.broadcast %cst_88 : f32 to vector<2x128xf32>
    %458 = arith.addf %457, %456 : vector<2x128xf32>
    %459 = arith.divf %457, %458 : vector<2x128xf32>
    %460 = math.tanh %454 : vector<2x128xf32>
    %461 = vector.extract_strided_slice %459 {offsets = [0, 0], sizes = [2, 32], strides = [1, 1]} : vector<2x128xf32> to vector<2x32xf32>
    %462 = vector.extract_strided_slice %459 {offsets = [0, 32], sizes = [2, 32], strides = [1, 1]} : vector<2x128xf32> to vector<2x32xf32>
    %463 = vector.extract_strided_slice %460 {offsets = [0, 64], sizes = [2, 32], strides = [1, 1]} : vector<2x128xf32> to vector<2x32xf32>
    %464 = vector.extract_strided_slice %459 {offsets = [0, 96], sizes = [2, 32], strides = [1, 1]} : vector<2x128xf32> to vector<2x32xf32>
    %465 = arith.mulf %462, %429 : vector<2x32xf32>
    %466 = arith.mulf %461, %463 : vector<2x32xf32>
    %467 = arith.addf %465, %466 : vector<2x32xf32>
    %468 = math.tanh %467 : vector<2x32xf32>
    %469 = arith.mulf %464, %468 : vector<2x32xf32>
    %cst_89 = arith.constant dense<0.000000e+00> : vector<2x128xf32>
    %470 = tpu.matmul %450, %5, %cst_89 {dimension_numbers = #tpu.dot_dimension_numbers<[1], [0], [0], [1], [0, 0, 1, 1], [], []>} : vector<2x32xf32>, vector<32x128xf32>, vector<2x128xf32> -> vector<2x128xf32>
    %cst_90 = arith.constant dense<0.000000e+00> : vector<2x128xf32>
    %471 = tpu.matmul %469, %6, %cst_90 {dimension_numbers = #tpu.dot_dimension_numbers<[1], [0], [0], [1], [0, 0, 1, 1], [], []>} : vector<2x32xf32>, vector<32x128xf32>, vector<2x128xf32> -> vector<2x128xf32>
    %472 = arith.addf %470, %471 : vector<2x128xf32>
    %473 = arith.addf %472, %15 : vector<2x128xf32>
    %474 = arith.negf %473 : vector<2x128xf32>
    %475 = math.exp %474 : vector<2x128xf32>
    %cst_91 = arith.constant 1.000000e+00 : f32
    %476 = vector.broadcast %cst_91 : f32 to vector<2x128xf32>
    %477 = arith.addf %476, %475 : vector<2x128xf32>
    %478 = arith.divf %476, %477 : vector<2x128xf32>
    %479 = math.tanh %473 : vector<2x128xf32>
    %480 = vector.extract_strided_slice %478 {offsets = [0, 0], sizes = [2, 32], strides = [1, 1]} : vector<2x128xf32> to vector<2x32xf32>
    %481 = vector.extract_strided_slice %478 {offsets = [0, 32], sizes = [2, 32], strides = [1, 1]} : vector<2x128xf32> to vector<2x32xf32>
    %482 = vector.extract_strided_slice %479 {offsets = [0, 64], sizes = [2, 32], strides = [1, 1]} : vector<2x128xf32> to vector<2x32xf32>
    %483 = vector.extract_strided_slice %478 {offsets = [0, 96], sizes = [2, 32], strides = [1, 1]} : vector<2x128xf32> to vector<2x32xf32>
    %484 = arith.mulf %481, %467 : vector<2x32xf32>
    %485 = arith.mulf %480, %482 : vector<2x32xf32>
    %486 = arith.addf %484, %485 : vector<2x32xf32>
    %487 = math.tanh %486 : vector<2x32xf32>
    %488 = arith.mulf %483, %487 : vector<2x32xf32>
    %489 = tpu.concatenate %136, %195, %254, %313, %372, %431, %469, %488 in 1 : vector<2x32xf32>, vector<2x32xf32>, vector<2x32xf32>, vector<2x32xf32>, vector<2x32xf32>, vector<2x32xf32>, vector<2x32xf32>, vector<2x32xf32> -> vector<2x256xf32>
    %c0_92 = arith.constant 0 : index
    %c0_93 = arith.constant 0 : index
    %490 = vector.load %arg10[%c0_92, %c0_93] : memref<256x4xf32, #tpu.memory_space<vmem>>, vector<256x4xf32>
    %cst_94 = arith.constant dense<0.000000e+00> : vector<2x4xf32>
    %491 = tpu.matmul %489, %490, %cst_94 {dimension_numbers = #tpu.dot_dimension_numbers<[1], [0], [0], [1], [0, 0, 1, 1], [], []>} : vector<2x256xf32>, vector<256x4xf32>, vector<2x4xf32> -> vector<2x4xf32>
    %c0_95 = arith.constant 0 : index
    %c0_96 = arith.constant 0 : index
    %492 = vector.load %arg11[%c0_95, %c0_96] : memref<1x4xf32, #tpu.memory_space<vmem>>, vector<1x4xf32>
    %493 = vector.broadcast %492 : vector<1x4xf32> to vector<2x4xf32>
    %494 = arith.addf %491, %493 : vector<2x4xf32>
    %c0_97 = arith.constant 0 : index
    %c0_98 = arith.constant 0 : index
    %495 = vector.load %arg12[%c0_97, %c0_98] : memref<2x4xf32, #tpu.memory_space<vmem>>, vector<2x4xf32>
    tpu.vector_store %arg12[%c0_97, %c0_98], %494 {strides = array<i32>} : memref<2x4xf32, #tpu.memory_space<vmem>>, vector<2x4xf32>,
    return
  }
}

</mosaic_0001>

<bundles_post_ra>
// kernel: simple_lstm_forward.1
= control target key start
LH: loop header
LB: loop body
LE: loop exit
PB: predicated region body
PF: predicated region fallthrough
CT: control target
= control target key end

     0   :  { %vm168_vm0 = vcmask 1043456   ;;  %v5426_v2 = vmov 0.0   ;;  %vm163_vm1 = vcmask 1041409   ;;  %vm165_vm2 = vcmask 31744   ;;  %s6610_s0 = inlined_call_operand.vmem [shape: f32[2,8,4], index: 0, kind: input, shape index: {}]   ;;  %s6611_s1 = inlined_call_operand.vmem [shape: f32[4,128], index: 1, kind: input, shape index: {}]   ;;  %s6612_s2 = inlined_call_operand.vmem [shape: f32[32,128], index: 2, kind: input, shape index: {}]   ;;  %s6613_s3 = inlined_call_operand.vmem [shape: f32[1,128], index: 3, kind: input, shape index: {}]   ;;  %s6614_s4 = inlined_call_operand.vmem [shape: f32[32,128], index: 4, kind: input, shape index: {}]   ;;  %s6615_s5 = inlined_call_operand.vmem [shape: f32[32,128], index: 5, kind: input, shape index: {}]   ;;  %s6616_s6 = inlined_call_operand.vmem [shape: f32[1,128], index: 6, kind: input, shape index: {}]   ;;  %s6617_s7 = inlined_call_operand.vmem [shape: f32[32,128], index: 7, kind: input, shape index: {}]   ;;  %s6618_s8 = inlined_call_operand.vmem [shape: f32[32,128], index: 8, kind: input, shape index: {}]   ;;  %s6619_s9 = inlined_call_operand.vmem [shape: f32[1,128], index: 9, kind: input, shape index: {}]   ;;  %s6620_s10 = inlined_call_operand.vmem [shape: f32[256,4], index: 10, kind: input, shape index: {}]   ;;  %s6621_s11 = inlined_call_operand.vmem [shape: f32[1,4], index: 11, kind: input, shape index: {}]   ;;  %s6622_s12 = inlined_call_operand.hbm [shape: f32[2,4], index: 12, kind: output, shape index: {}]  }
   0x1   :  { %v5500_v0 = vld [vmem:[%s6612_s2 + $0x18] sm:$0xff]  ;;  %v5505_v1 = vld [vmem:[%s6612_s2 + $0x10] sm:$0xff]  ;;  %4690 = vmatprep.subr.mxu0 %v5426_v2  ;;  %4701 = vmatprep.subr.mxu1 %v5426_v2  ;;  %v5512_v3 = vld [vmem:[%s6611_s1] sm:$0xf] }
   0x2   :  { %v5517_v4 = vld [vmem:[%s6610_s0] sm:$0xff]  ;;  %v5522_v5 = vld [vmem:[%s6610_s0 + $0x8] sm:$0xff]  ;;  %4691 = vmatpush3.msra.mxu0 %v5500_v0  ;;  %4702 = vmatpush3.msk.msra.mxu1 %vm168_vm0, %v5512_v3 }
   0x3   :  { %v162_v6 = vrot.slane %v5522_v5, 7 }
   0x4   :  { %17 = vsyncpa [#allocation3], 0  ;;  %4692 = vmatprep.subr.mxu0 %v5426_v2  ;;  %v5532_v7 = vld [vmem:[%s6612_s2 + $0x8] sm:$0xff]  ;;  %vm5427_vm3 = vmmov 0   ;;  %v5546_v9 = vld [vmem:[%s6612_s2] sm:$0xff]  ;;  %4744 = vmatprep.subr.mxu1 %v5426_v2  ;;  %s5428_s19 = smov 64  }
   0x5   :  { %4703 = vmatprep.mubr.msk.f32.mxu1 %vm5427_vm3, %v5426_v2  ;;  %4693 = vmatpush3.msra.mxu0 %v5505_v1  ;;  %v164_v8 = vsel %vm163_vm1, %v162_v6, %v5517_v4  ;;  %v5577_v12 = vld [vmem:[%s6613_s3] ss:$0 sm:$0xff]  ;;  %s5429_s20 = smov 32   ;;  %vm86_vm4 = vcmask 261120   ;;  %v342_v30 = vrot.slane %v5517_v4, 1  ;;  %v5599_v33 = vld [vmem:[%s6615_s5 + $0x18] sm:$0xff] }
   0x6   :  { %4698 = vmatprep.mubr.msk.f32.mxu0 %vm5427_vm3, %v5426_v2  ;;  %4694 = vmatprep.subr.mxu0 %v5426_v2  ;;  %v5605_v34 = vld [vmem:[%s6615_s5 + $0x10] sm:$0xff]  ;;  %v5614_v35 = vld [vmem:[%s6615_s5 + $0x8] sm:$0xff]  ;;  %v5621_v36 = vld [vmem:[%s6615_s5] sm:$0xff]  ;;  %s5430_s18 = smov 96   ;;  %vm4226_vm5 = vcmask 523264   ;;  %vm4228_vm6 = vcmask 785408  }
   0x7   :  { %4704 = vmatmul.mubr.msk.f32.vlgmr.msra.gmra.mxu1 %vm165_vm2, %v164_v8  ;;  %4695 = vmatpush3.msra.mxu0 %v5532_v7  ;;  %v343_v32 = vsel %vm163_vm1, %v5522_v5, %v342_v30  ;;  %v5628_v37 = vld [vmem:[%s6614_s4 + $0x18] sm:$0xff]  ;;  %v5636_v38 = vld [vmem:[%s6614_s4 + $0x10] sm:$0xff]  ;;  %v5645_v39 = vld [vmem:[%s6614_s4 + $0x8] sm:$0xff]  ;;  %s5431_s21 = smov [#allocation2]   ;;  %vm4342_vm7 = vcmask 25600  }
   0x8   :  { %4696 = vmatprep.subr.mxu0 %v5426_v2  ;;  %4745 = vmatpush3.msra.mxu1 %v5500_v0  ;;  %v5652_v40 = vld [vmem:[%s6614_s4] sm:$0xff]  ;;  %v5720_v30 = vld [vmem:[%s6617_s7 + $0x10] sm:$0xff]  ;;  %s4350_s22 = sshll.u32 %s5431_s21, 4  ;;  %s4351_s22 = int_to_ptr.vmem [resolvable:$true] %s4350_s22 }
   0x9   :  { %4697 = vmatpush3.msra.mxu0 %v5546_v9  ;;  %4746 = vmatprep.subr.mxu1 %v5426_v2  ;;  %v5668_v49 = vld [vmem:[%s6616_s6] ss:$0 sm:$0xff]  ;;  %s5404_s23 = scalar_lea.vmem %s4351_s22, 32  ;;  %p5409_p1 = scmp.lt.s32.totalorder %s4351_s22, %s4351_s22 }
   0xa   :  { %4699 = vmatmul.mubr.f32.vlgmr.msra.gmra.mxu0 %v5426_v2  ;;  %4706 = vmatprep.subr.mxu0 %v5426_v2  ;;  %p5405_p0 = scmp.ne.s32.totalorder %s4351_s22, %s5404_s23  ;;  %p5410_p2 = scmp.lt.s32.totalorder %s5404_s23, %s5404_s23 }
   0xb   :  { %4707 = vmatpush3.msra.mxu0 %v5500_v0  ;;  %4714 = vmatprep.mubr.msk.f32.mxu0 %vm5427_vm3, %v5426_v2 }
   0xc   :  { %4708 = vmatprep.subr.mxu0 %v5426_v2  ;;  %4747 = vmatpush3.msra.mxu1 %v5505_v1  ;;  %p5411_p3 = por %p5410_p2, %p5409_p1 }
   0xd   :  { %4709 = vmatpush3.msra.mxu0 %v5505_v1  ;;  %4748 = vmatprep.subr.mxu1 %v5426_v2 }
   0xe   :  { %4710 = vmatprep.subr.mxu0 %v5426_v2  ;;  %4749 = vmatpush3.msra.mxu1 %v5532_v7  ;;  %p5412_p4 = pnand %p5411_p3, %p5405_p0 }
   0xf   :  { %4711 = vmatpush3.msra.mxu0 %v5532_v7  ;;  %4750 = vmatprep.subr.mxu1 %v5426_v2 }
  0x10   :  { %4712 = vmatprep.subr.mxu0 %v5426_v2  ;;  %4751 = vmatpush3.msra.mxu1 %v5546_v9 }
  0x11   :  { %4713 = vmatpush3.msra.mxu0 %v5546_v9  ;;  %4752 = vmatprep.mubr.msk.f32.mxu1 %vm5427_vm3, %v5426_v2 }
  0x12   :  { %4717 = vmatprep.subr.mxu0 %v5426_v2  ;;  %4771 = vmatprep.subr.mxu1 %v5426_v2 }
  0xc7   :  { %v238_v10 = vpop.f32.mrf.mxu1 }
  0xc9   :  { %v4705_v11 = vpop.f32.mrf.mxu1 }
  0xca   :  { %v156_v13 = vpop.f32.mrf.mxu0 }
  0xcb   :  { %v239_v14 = vadd.f32 %v238_v10, %v156_v13 }
  0xcc   :  { %v4700_v15 = vpop.f32.mrf.mxu0 }
  0xcd   :  { %v242_v16 = vadd.f32 %v5577_v12, %v239_v14 }
  0xcf   :  { %5186 = vtanh.f32 %v242_v16  ;;  %v4363_v18 = vmul.f32 -1.442695, %v242_v16 }
  0xd1   :  { %5188 = vpow2.f32 %v4363_v18 }
  0xdc   :  { %v5187_v17 = vpop.eup %5186 }
  0xdd   :  { %252 = vrot.lane.b32.xlu0 %v5187_v17, %s5428_s19 }
  0xde   :  { %v5189_v19 = vpop.eup %5188 }
  0xdf   :  { %v246_v20 = vadd.f32 1.0, %v5189_v19 }
  0xe1   :  { %5190 = vrcp.f32 %v246_v20 }
  0xee   :  { %v5191_v21 = vpop.eup %5190 }
  0xef   :  { %v250_v24 = vmul.f32 0.0, %v5191_v21 }
 0x14f   :  { %v253_v22 = vpop.permute.xlu0 %252 }
 0x150   :  { %v255_v23 = vmul.f32 %v5191_v21, %v253_v22  ;;  %v682_v22 = vrot.slane %v5522_v5, 1 }
 0x152   :  { %257 = vrot.lane.b32.xlu0 %v255_v23, %s5429_s20 }
 0x1c4   :  { %v258_v25 = vpop.permute.xlu0 %257 }
 0x1c5   :  { %v5582_v26 = vadd.f32 %v258_v25, %v250_v24 }
 0x1c7   :  { %5192 = vtanh.f32 %v5582_v26 }
 0x1d4   :  { %v5193_v27 = vpop.eup %5192 }
 0x1d5   :  { %263 = vrot.lane.b32.xlu1 %v5193_v27, %s5428_s19 }
 0x247   :  { %v264_v28 = vpop.permute.xlu1 %263 }
 0x248   :  { %v266_v29 = vmul.f32 %v5191_v21, %v264_v28  ;;  %v681_v21 = vrot.slane %v5517_v4, 2 }
 0x24a   :  { %268 = vrot.lane.b32.xlu1 %v266_v29, %s5429_s20  ;;  %v683_v23 = vsel %vm163_vm1, %v682_v22, %v681_v21  ;;  %v5712_v29 = vld [vmem:[%s6617_s7 + $0x18] sm:$0xff] }
 0x2bc   :  { %v269_v31 = vpop.permute.xlu1 %268 }
 0x2bd   :  { %4715 = vmatmul.mubr.msk.f32.vlgmr.msra.gmra.mxu0 %vm86_vm4, %v269_v31 }
 0x2be   :  { %4718 = vmatpush3.msk.msra.mxu0 %vm168_vm0, %v5512_v3  ;;  %4719 = vmatprep.mubr.msk.f32.mxu0 %vm5427_vm3, %v5426_v2 }
 0x2bf   :  { %4722 = vmatprep.subr.mxu0 %v5426_v2 }
 0x2c1   :  { %4720 = vmatmul.mubr.msk.f32.vlgmr.msra.gmra.mxu0 %vm165_vm2, %v343_v32  ;;  %v5736_v32 = vld [vmem:[%s6617_s7] sm:$0xff] }
 0x2c2   :  { %4723 = vmatpush3.msra.mxu0 %v5599_v33  ;;  %4730 = vmatprep.mubr.msk.f32.mxu0 %vm5427_vm3, %v5426_v2 }
 0x2c3   :  { %4724 = vmatprep.subr.mxu0 %v5426_v2 }
 0x2c4   :  { %4725 = vmatpush3.msra.mxu0 %v5605_v34 }
 0x2c5   :  { %4726 = vmatprep.subr.mxu0 %v5426_v2 }
 0x2c6   :  { %4727 = vmatpush3.msra.mxu0 %v5614_v35 }
 0x2c7   :  { %4728 = vmatprep.subr.mxu0 %v5426_v2 }
 0x2c8   :  { %4729 = vmatpush3.msra.mxu0 %v5621_v36 }
 0x2c9   :  { %4731 = vmatmul.mubr.f32.vlgmr.msra.gmra.mxu0 %v5426_v2  ;;  %4733 = vmatprep.subr.mxu0 %v5426_v2 }
 0x2ca   :  { %4734 = vmatpush3.msra.mxu0 %v5628_v37  ;;  %4741 = vmatprep.mubr.msk.f32.mxu0 %vm5427_vm3, %v5426_v2 }
 0x2cb   :  { %4735 = vmatprep.subr.mxu0 %v5426_v2 }
 0x2cc   :  { %4736 = vmatpush3.msra.mxu0 %v5636_v38 }
 0x2cd   :  { %4737 = vmatprep.subr.mxu0 %v5426_v2 }
 0x2ce   :  { %4738 = vmatpush3.msra.mxu0 %v5645_v39 }
 0x2cf   :  { %4739 = vmatprep.subr.mxu0 %v5426_v2 }
 0x2d0   :  { %4740 = vmatpush3.msra.mxu0 %v5652_v40 }
 0x2d1   :  { %4742 = vmatmul.mubr.msk.f32.vlgmr.msra.gmra.mxu0 %vm86_vm4, %v269_v31  ;;  %4755 = vmatprep.subr.mxu0 %v5426_v2  ;;  %v5729_v31 = vld [vmem:[%s6617_s7 + $0x8] sm:$0xff] }
 0x2d2   :  { %4756 = vmatpush3.msk.msra.mxu0 %vm168_vm0, %v5512_v3  ;;  %4757 = vmatprep.mubr.msk.f32.mxu0 %vm5427_vm3, %v5426_v2 }
 0x2d3   :  { %4760 = vmatprep.subr.mxu0 %v5426_v2 }
 0x2d5   :  { %4758 = vmatmul.mubr.msk.f32.vlgmr.msra.gmra.mxu0 %vm165_vm2, %v683_v23 }
 0x2d6   :  { %4761 = vmatpush3.msra.mxu0 %v5599_v33  ;;  %4768 = vmatprep.mubr.msk.f32.mxu0 %vm5427_vm3, %v5426_v2 }
 0x2d7   :  { %4762 = vmatprep.subr.mxu0 %v5426_v2 }
 0x2d8   :  { %4763 = vmatpush3.msra.mxu0 %v5605_v34 }
 0x2d9   :  { %4764 = vmatprep.subr.mxu0 %v5426_v2 }
 0x2da   :  { %4765 = vmatpush3.msra.mxu0 %v5614_v35 }
 0x2db   :  { %4766 = vmatprep.subr.mxu0 %v5426_v2 }
 0x2dc   :  { %4767 = vmatpush3.msra.mxu0 %v5621_v36 }
 0x2dd   :  { %4782 = vmatprep.subr.mxu0 %v5426_v2 }
 0x37d   :  { %v338_v41 = vpop.f32.mrf.mxu0 }
 0x37f   :  { %v4716_v42 = vpop.f32.mrf.mxu0 }
 0x381   :  { %v412_v43 = vpop.f32.mrf.mxu0 }
 0x382   :  { %v413_v44 = vadd.f32 %v412_v43, %v338_v41  ;;  %v5743_v41 = vld [vmem:[%s6618_s8 + $0x18] sm:$0xff]  ;;  %v5751_v43 = vld [vmem:[%s6618_s8 + $0x10] sm:$0xff] }
 0x383   :  { %v4721_v45 = vpop.f32.mrf.mxu0 }
 0x384   :  { %v416_v46 = vadd.f32 %v5577_v12, %v413_v44  ;;  %v5760_v44 = vld [vmem:[%s6618_s8 + $0x8] sm:$0xff]  ;;  %v5770_v45 = vld [vmem:[%s6618_s8] sm:$0xff] }
 0x386   :  { %5194 = vtanh.f32 %v416_v46  ;;  %v4367_v56 = vmul.f32 -1.442695, %v416_v46 }
 0x389   :  { %v507_v47 = vpop.f32.mrf.mxu0 }
 0x38b   :  { %v4732_v48 = vpop.f32.mrf.mxu0 }
 0x391   :  { %v577_v50 = vpop.f32.mrf.mxu0 }
 0x392   :  { %v578_v51 = vadd.f32 %v577_v50, %v507_v47 }
 0x393   :  { %v5195_v52 = vpop.eup %5194  ;;  %v4743_v53 = vpop.f32.mrf.mxu0 }
 0x394   :  { %v581_v54 = vadd.f32 %v5668_v49, %v578_v51  ;;  %426 = vrot.lane.b32.xlu0 %v5195_v52, %s5428_s19 }
 0x395   :  { %v752_v46 = vpop.f32.mrf.mxu0 }
 0x396   :  { %5196 = vtanh.f32 %v581_v54  ;;  %v4369_v57 = vmul.f32 -1.442695, %v581_v54 }
 0x397   :  { %5198 = vpow2.f32 %v4367_v56  ;;  %v4759_v47 = vpop.f32.mrf.mxu0 }
 0x398   :  { %5200 = vpow2.f32 %v4369_v57 }
 0x3a3   :  { %v5197_v55 = vpop.eup %5196 }
 0x3a4   :  { %591 = vrot.lane.b32.xlu1 %v5197_v55, %s5428_s19  ;;  %v5199_v58 = vpop.eup %5198 }
 0x3a5   :  { %v420_v59 = vadd.f32 1.0, %v5199_v58  ;;  %v5201_v60 = vpop.eup %5200 }
 0x3a6   :  { %v585_v61 = vadd.f32 1.0, %v5201_v60 }
 0x3a7   :  { %5202 = vrcp.f32 %v420_v59 }
 0x3a8   :  { %5204 = vrcp.f32 %v585_v61 }
 0x3b4   :  { %v5203_v62 = vpop.eup %5202 }
 0x3b5   :  { %v5205_v8 = vpop.eup %5204  ;;  %v424_v13 = vmul.f32 %v5203_v62, %v5582_v26 }
 0x3b6   :  { %v589_v16 = vmul.f32 0.0, %v5205_v8 }
 0x406   :  { %v427_v63 = vpop.permute.xlu0 %426 }
 0x407   :  { %v429_v6 = vmul.f32 %v5203_v62, %v427_v63 }
 0x409   :  { %431 = vrot.lane.b32.xlu0 %v429_v6, %s5429_s20 }
 0x416   :  { %v592_v10 = vpop.permute.xlu1 %591 }
 0x417   :  { %v594_v11 = vmul.f32 %v5205_v8, %v592_v10 }
 0x419   :  { %596 = vrot.lane.b32.xlu1 %v594_v11, %s5429_s20 }
 0x47b   :  { %v432_v14 = vpop.permute.xlu0 %431 }
 0x47c   :  { %v5676_v15 = vadd.f32 %v432_v14, %v424_v13 }
 0x47e   :  { %5206 = vtanh.f32 %v5676_v15 }
 0x48b   :  { %v5207_v17 = vpop.eup %5206  ;;  %v597_v18 = vpop.permute.xlu1 %596 }
 0x48c   :  { %v5679_v19 = vadd.f32 %v597_v18, %v589_v16  ;;  %437 = vrot.lane.b32.xlu0 %v5207_v17, %s5428_s19 }
 0x48e   :  { %5208 = vtanh.f32 %v5679_v19 }
 0x49b   :  { %v5209_v20 = vpop.eup %5208 }
 0x49c   :  { %602 = vrot.lane.b32.xlu1 %v5209_v20, %s5428_s19 }
 0x4fe   :  { %v438_v24 = vpop.permute.xlu0 %437 }
 0x4ff   :  { %v440_v25 = vmul.f32 %v5203_v62, %v438_v24  ;;  %v5796_v62 = vld [vmem:[%s6619_s9] ss:$0 sm:$0xff] }
 0x501   :  { %607 = vrot.lane.b32.xlu0 %v440_v25, %s5429_s20 }
 0x50e   :  { %v603_v26 = vpop.permute.xlu1 %602 }
 0x50f   :  { %v605_v27 = vmul.f32 %v5205_v8, %v603_v26 }
 0x511   :  { %782 = vrot.lane.b32.xlu1 %v605_v27, %s5429_s20 }
 0x573   :  { %v608_v28 = vpop.permute.xlu0 %607 }
 0x574   :  { %4753 = vmatmul.mubr.msk.f32.vlgmr.msra.gmra.mxu1 %vm86_vm4, %v608_v28 }
 0x575   :  { %4772 = vmatpush3.msra.mxu1 %v5628_v37  ;;  %4779 = vmatprep.mubr.msk.f32.mxu1 %vm5427_vm3, %v5426_v2 }
 0x576   :  { %4773 = vmatprep.subr.mxu1 %v5426_v2 }
 0x577   :  { %4774 = vmatpush3.msra.mxu1 %v5636_v38 }
 0x578   :  { %4775 = vmatprep.subr.mxu1 %v5426_v2 }
 0x579   :  { %4776 = vmatpush3.msra.mxu1 %v5645_v39 }
 0x57a   :  { %4777 = vmatprep.subr.mxu1 %v5426_v2 }
 0x57b   :  { %4778 = vmatpush3.msra.mxu1 %v5652_v40 }
 0x57c   :  { %4780 = vmatmul.mubr.msk.f32.vlgmr.msra.gmra.mxu1 %vm86_vm4, %v608_v28  ;;  %4793 = vmatprep.subr.mxu1 %v5426_v2 }
 0x57d   :  { %4794 = vmatpush3.msra.mxu1 %v5712_v29  ;;  %4801 = vmatprep.mubr.msk.f32.mxu1 %vm5427_vm3, %v5426_v2 }
 0x57e   :  { %4795 = vmatprep.subr.mxu1 %v5426_v2 }
 0x57f   :  { %4796 = vmatpush3.msra.mxu1 %v5720_v30 }
 0x580   :  { %4797 = vmatprep.subr.mxu1 %v5426_v2 }
 0x581   :  { %4798 = vmatpush3.msra.mxu1 %v5729_v31 }
 0x582   :  { %4799 = vmatprep.subr.mxu1 %v5426_v2 }
 0x583   :  { %4800 = vmatpush3.msra.mxu1 %v5736_v32  ;;  %v783_v42 = vpop.permute.xlu1 %782 }
 0x584   :  { %4769 = vmatmul.mubr.msk.f32.vlgmr.msra.gmra.mxu0 %vm86_vm4, %v783_v42  ;;  %4802 = vmatmul.mubr.msk.f32.vlgmr.msra.gmra.mxu1 %vm86_vm4, %v783_v42 }
 0x585   :  { %4783 = vmatpush3.msra.mxu0 %v5743_v41  ;;  %4790 = vmatprep.mubr.msk.f32.mxu0 %vm5427_vm3, %v5426_v2 }
 0x586   :  { %4784 = vmatprep.subr.mxu0 %v5426_v2  ;;  %4815 = vmatprep.subr.mxu1 %v5426_v2 }
 0x587   :  { %4785 = vmatpush3.msra.mxu0 %v5751_v43  ;;  %4816 = vmatpush3.msk.msra.mxu1 %vm168_vm0, %v5512_v3 }
 0x588   :  { %4786 = vmatprep.subr.mxu0 %v5426_v2  ;;  %4817 = vmatprep.mubr.msk.f32.mxu1 %vm5427_vm3, %v5426_v2 }
 0x589   :  { %4787 = vmatpush3.msra.mxu0 %v5760_v44  ;;  %4820 = vmatprep.subr.mxu1 %v5426_v2 }
 0x58a   :  { %4788 = vmatprep.subr.mxu0 %v5426_v2 }
 0x58b   :  { %4789 = vmatpush3.msra.mxu0 %v5770_v45 }
 0x58c   :  { %4791 = vmatmul.mubr.f32.vlgmr.msra.gmra.mxu0 %v5426_v2  ;;  %4804 = vmatprep.subr.mxu0 %v5426_v2 }
 0x58d   :  { %4805 = vmatpush3.msra.mxu0 %v5500_v0  ;;  %4812 = vmatprep.mubr.msk.f32.mxu0 %vm5427_vm3, %v5426_v2 }
 0x58e   :  { %4806 = vmatprep.subr.mxu0 %v5426_v2 }
 0x58f   :  { %4807 = vmatpush3.msra.mxu0 %v5505_v1 }
 0x590   :  { %4808 = vmatprep.subr.mxu0 %v5426_v2 }
 0x591   :  { %4809 = vmatpush3.msra.mxu0 %v5532_v7 }
 0x592   :  { %4810 = vmatprep.subr.mxu0 %v5426_v2 }
 0x593   :  { %4811 = vmatpush3.msra.mxu0 %v5546_v9 }
 0x594   :  { %4831 = vmatprep.subr.mxu0 %v5426_v2 }
 0x634   :  { %v677_v48 = vpop.f32.mrf.mxu1 }
 0x635   :  { %v753_v50 = vadd.f32 %v752_v46, %v677_v48 }
 0x636   :  { %v4754_v51 = vpop.f32.mrf.mxu1 }
 0x637   :  { %v756_v52 = vadd.f32 %v5577_v12, %v753_v50 }
 0x639   :  { %5210 = vtanh.f32 %v756_v52  ;;  %v4373_v14 = vmul.f32 -1.442695, %v756_v52 }
 0x63c   :  { %v922_v53 = vpop.f32.mrf.mxu1 }
 0x63e   :  { %v4781_v54 = vpop.f32.mrf.mxu1 }
 0x644   :  { %v852_v55 = vpop.f32.mrf.mxu0  ;;  %v1087_v56 = vpop.f32.mrf.mxu1 }
 0x645   :  { %v923_v57 = vadd.f32 %v922_v53, %v852_v55 }
 0x646   :  { %v5211_v58 = vpop.eup %5210  ;;  %v4770_v59 = vpop.f32.mrf.mxu0 }
 0x647   :  { %v4803_v60 = vpop.f32.mrf.mxu1  ;;  %v926_v61 = vadd.f32 %v5668_v49, %v923_v57  ;;  %766 = vrot.lane.b32.xlu0 %v5211_v58, %s5428_s19 }
 0x649   :  { %5212 = vtanh.f32 %v926_v61  ;;  %v4376_v16 = vmul.f32 -1.442695, %v926_v61 }
 0x64c   :  { %v1017_v63 = vpop.f32.mrf.mxu0 }
 0x64d   :  { %v1088_v6 = vadd.f32 %v1087_v56, %v1017_v63  ;;  %v1192_v63 = vrot.slane %v5522_v5, 2 }
 0x64e   :  { %v4792_v8 = vpop.f32.mrf.mxu0 }
 0x64f   :  { %v1091_v10 = vadd.f32 %v5796_v62, %v1088_v6 }
 0x651   :  { %5214 = vtanh.f32 %v1091_v10  ;;  %v4378_v20 = vmul.f32 -1.442695, %v1091_v10 }
 0x652   :  { %5216 = vpow2.f32 %v4373_v14 }
 0x653   :  { %5218 = vpow2.f32 %v4376_v16 }
 0x656   :  { %v5213_v11 = vpop.eup %5212 }
 0x657   :  { %936 = vrot.lane.b32.xlu1 %v5213_v11, %s5428_s19 }
 0x65e   :  { %v5215_v13 = vpop.eup %5214 }
 0x65f   :  { %1101 = vrot.lane.b32.xlu0 %v5215_v13, %s5428_s19  ;;  %v5217_v17 = vpop.eup %5216 }
 0x660   :  { %v760_v18 = vadd.f32 1.0, %v5217_v17  ;;  %v5219_v21 = vpop.eup %5218 }
 0x661   :  { %v930_v22 = vadd.f32 1.0, %v5219_v21 }
 0x662   :  { %5220 = vrcp.f32 %v760_v18 }
 0x663   :  { %5222 = vpow2.f32 %v4378_v20 }
 0x664   :  { %5224 = vrcp.f32 %v930_v22 }
 0x66f   :  { %v5221_v23 = vpop.eup %5220 }
 0x670   :  { %v5223_v26 = vpop.eup %5222  ;;  %v764_v51 = vmul.f32 %v5221_v23, %v5676_v15 }
 0x671   :  { %v1095_v27 = vadd.f32 1.0, %v5223_v26  ;;  %v5225_v28 = vpop.eup %5224 }
 0x672   :  { %v934_v54 = vmul.f32 %v5225_v28, %v5679_v19  ;;  %v1191_v19 = vrot.slane %v5517_v4, 3 }
 0x673   :  { %5226 = vrcp.f32 %v1095_v27 }
 0x674   :  { %v1193_v6 = vsel %vm163_vm1, %v1192_v63, %v1191_v19 }
 0x675   :  { %4818 = vmatmul.mubr.msk.f32.vlgmr.msra.gmra.mxu1 %vm165_vm2, %v1193_v6 }
 0x676   :  { %4821 = vmatpush3.msra.mxu1 %v5599_v33  ;;  %4828 = vmatprep.mubr.msk.f32.mxu1 %vm5427_vm3, %v5426_v2 }
 0x677   :  { %4822 = vmatprep.subr.mxu1 %v5426_v2 }
 0x678   :  { %4823 = vmatpush3.msra.mxu1 %v5605_v34 }
 0x679   :  { %4824 = vmatprep.subr.mxu1 %v5426_v2 }
 0x67a   :  { %4825 = vmatpush3.msra.mxu1 %v5614_v35 }
 0x67b   :  { %4826 = vmatprep.subr.mxu1 %v5426_v2 }
 0x67c   :  { %4827 = vmatpush3.msra.mxu1 %v5621_v36 }
 0x67d   :  { %4842 = vmatprep.subr.mxu1 %v5426_v2 }
 0x680   :  { %v5227_v47 = vpop.eup %5226 }
 0x681   :  { %v1099_v58 = vmul.f32 0.0, %v5227_v47 }
 0x6b9   :  { %v767_v24 = vpop.permute.xlu0 %766 }
 0x6ba   :  { %v769_v25 = vmul.f32 %v5221_v23, %v767_v24 }
 0x6bc   :  { %771 = vrot.lane.b32.xlu1 %v769_v25, %s5429_s20 }
 0x6c9   :  { %v937_v42 = vpop.permute.xlu1 %936 }
 0x6ca   :  { %v939_v46 = vmul.f32 %v5225_v28, %v937_v42 }
 0x6cc   :  { %941 = vrot.lane.b32.xlu0 %v939_v46, %s5429_s20 }
 0x6d1   :  { %v1102_v48 = vpop.permute.xlu0 %1101 }
 0x6d2   :  { %v1104_v50 = vmul.f32 %v5227_v47, %v1102_v48 }
 0x6d4   :  { %1106 = vrot.lane.b32.xlu1 %v1104_v50, %s5429_s20 }
 0x72e   :  { %v772_v52 = vpop.permute.xlu1 %771 }
 0x72f   :  { %v5805_v53 = vadd.f32 %v772_v52, %v764_v51 }
 0x731   :  { %5228 = vtanh.f32 %v5805_v53 }
 0x735   :  { %v1262_v21 = vpop.f32.mrf.mxu1 }
 0x737   :  { %v4819_v22 = vpop.f32.mrf.mxu1 }
 0x73e   :  { %v5229_v55 = vpop.eup %5228  ;;  %v942_v56 = vpop.permute.xlu0 %941 }
 0x73f   :  { %v5809_v57 = vadd.f32 %v942_v56, %v934_v54  ;;  %777 = vrot.lane.b32.xlu0 %v5229_v55, %s5428_s19 }
 0x741   :  { %5230 = vtanh.f32 %v5809_v57 }
 0x746   :  { %v1107_v59 = vpop.permute.xlu1 %1106 }
 0x747   :  { %v5813_v60 = vadd.f32 %v1107_v59, %v1099_v58 }
 0x749   :  { %5232 = vtanh.f32 %v5813_v60 }
 0x74e   :  { %v5231_v15 = vpop.eup %5230 }
 0x74f   :  { %947 = vrot.lane.b32.xlu1 %v5231_v15, %s5428_s19 }
 0x756   :  { %v5233_v61 = vpop.eup %5232 }
 0x757   :  { %1112 = vrot.lane.b32.xlu0 %v5233_v61, %s5428_s19 }
 0x7b1   :  { %v778_v8 = vpop.permute.xlu0 %777 }
 0x7b2   :  { %v780_v10 = vmul.f32 %v5221_v23, %v778_v8 }
 0x7b4   :  { %1117 = vrot.lane.b32.xlu1 %v780_v10, %s5429_s20 }
 0x7c1   :  { %v948_v11 = vpop.permute.xlu1 %947 }
 0x7c2   :  { %v950_v13 = vmul.f32 %v5225_v28, %v948_v11 }
 0x7c4   :  { %1292 = vrot.lane.b32.xlu0 %v950_v13, %s5429_s20 }
 0x7c9   :  { %v1113_v14 = vpop.permute.xlu0 %1112 }
 0x7ca   :  { %v1115_v16 = vmul.f32 %v5227_v47, %v1113_v14 }
 0x7cc   :  { %1462 = vrot.lane.b32.xlu1 %v1115_v16, %s5429_s20 }
 0x826   :  { %v1118_v17 = vpop.permute.xlu1 %1117 }
 0x827   :  { %4813 = vmatmul.mubr.msk.f32.vlgmr.msra.gmra.mxu0 %vm86_vm4, %v1118_v17 }
 0x828   :  { %4832 = vmatpush3.msra.mxu0 %v5628_v37  ;;  %4839 = vmatprep.mubr.msk.f32.mxu0 %vm5427_vm3, %v5426_v2 }
 0x829   :  { %4833 = vmatprep.subr.mxu0 %v5426_v2 }
 0x82a   :  { %4834 = vmatpush3.msra.mxu0 %v5636_v38 }
 0x82b   :  { %4835 = vmatprep.subr.mxu0 %v5426_v2 }
 0x82c   :  { %4836 = vmatpush3.msra.mxu0 %v5645_v39 }
 0x82d   :  { %4837 = vmatprep.subr.mxu0 %v5426_v2 }
 0x82e   :  { %4838 = vmatpush3.msra.mxu0 %v5652_v40 }
 0x82f   :  { %4840 = vmatmul.mubr.msk.f32.vlgmr.msra.gmra.mxu0 %vm86_vm4, %v1118_v17  ;;  %4853 = vmatprep.subr.mxu0 %v5426_v2 }
 0x830   :  { %4854 = vmatpush3.msra.mxu0 %v5712_v29  ;;  %4861 = vmatprep.mubr.msk.f32.mxu0 %vm5427_vm3, %v5426_v2 }
 0x831   :  { %4855 = vmatprep.subr.mxu0 %v5426_v2 }
 0x832   :  { %4856 = vmatpush3.msra.mxu0 %v5720_v30 }
 0x833   :  { %4857 = vmatprep.subr.mxu0 %v5426_v2 }
 0x834   :  { %4858 = vmatpush3.msra.mxu0 %v5729_v31 }
 0x835   :  { %4859 = vmatprep.subr.mxu0 %v5426_v2 }
 0x836   :  { %4860 = vmatpush3.msra.mxu0 %v5736_v32  ;;  %v1293_v18 = vpop.permute.xlu0 %1292 }
 0x837   :  { %4829 = vmatmul.mubr.msk.f32.vlgmr.msra.gmra.mxu1 %vm86_vm4, %v1293_v18  ;;  %4862 = vmatmul.mubr.msk.f32.vlgmr.msra.gmra.mxu0 %vm86_vm4, %v1293_v18 }
 0x838   :  { %4843 = vmatpush3.msra.mxu1 %v5743_v41  ;;  %4850 = vmatprep.mubr.msk.f32.mxu1 %vm5427_vm3, %v5426_v2 }
 0x839   :  { %4844 = vmatprep.subr.mxu1 %v5426_v2  ;;  %4875 = vmatprep.subr.mxu0 %v5426_v2 }
 0x83a   :  { %4845 = vmatpush3.msra.mxu1 %v5751_v43  ;;  %4876 = vmatpush3.msk.msra.mxu0 %vm168_vm0, %v5512_v3 }
 0x83b   :  { %4846 = vmatprep.subr.mxu1 %v5426_v2  ;;  %4877 = vmatprep.mubr.msk.f32.mxu0 %vm5427_vm3, %v5426_v2 }
 0x83c   :  { %4847 = vmatpush3.msra.mxu1 %v5760_v44  ;;  %4880 = vmatprep.subr.mxu0 %v5426_v2 }
 0x83d   :  { %4848 = vmatprep.subr.mxu1 %v5426_v2 }
 0x83e   :  { %v5872_v20 = vpop.permute.xlu1 %1462  ;;  %4849 = vmatpush3.msra.mxu1 %v5770_v45 }
 0x83f   :  { %4851 = vmatmul.mubr.msk.f32.vlgmr.msra.gmra.mxu1 %vm86_vm4, %v5872_v20  ;;  %4864 = vmatprep.subr.mxu1 %v5426_v2 }
 0x840   :  { %4865 = vmatpush3.msra.mxu1 %v5500_v0  ;;  %4872 = vmatprep.mubr.msk.f32.mxu1 %vm5427_vm3, %v5426_v2 }
 0x841   :  { %4866 = vmatprep.subr.mxu1 %v5426_v2 }
 0x842   :  { %4867 = vmatpush3.msra.mxu1 %v5505_v1 }
 0x843   :  { %4868 = vmatprep.subr.mxu1 %v5426_v2 }
 0x844   :  { %4869 = vmatpush3.msra.mxu1 %v5532_v7 }
 0x845   :  { %4870 = vmatprep.subr.mxu1 %v5426_v2 }
 0x846   :  { %4871 = vmatpush3.msra.mxu1 %v5546_v9 }
 0x847   :  { %4891 = vmatprep.subr.mxu1 %v5426_v2 }
 0x8e7   :  { %v1187_v0 = vpop.f32.mrf.mxu0 }
 0x8e8   :  { %v1263_v23 = vadd.f32 %v1262_v21, %v1187_v0 }
 0x8e9   :  { %v4814_v24 = vpop.f32.mrf.mxu0 }
 0x8ea   :  { %v1266_v25 = vadd.f32 %v5577_v12, %v1263_v23 }
 0x8ec   :  { %5234 = vtanh.f32 %v1266_v25  ;;  %v4382_v59 = vmul.f32 -1.442695, %v1266_v25 }
 0x8ef   :  { %v1432_v26 = vpop.f32.mrf.mxu0 }
 0x8f1   :  { %v4841_v1 = vpop.f32.mrf.mxu0 }
 0x8f7   :  { %v1362_v27 = vpop.f32.mrf.mxu1  ;;  %v1602_v28 = vpop.f32.mrf.mxu0 }
 0x8f8   :  { %v1433_v42 = vadd.f32 %v1432_v26, %v1362_v27 }
 0x8f9   :  { %v5235_v46 = vpop.eup %5234  ;;  %v4830_v47 = vpop.f32.mrf.mxu1 }
 0x8fa   :  { %v4863_v48 = vpop.f32.mrf.mxu0  ;;  %v1436_v50 = vadd.f32 %v5668_v49, %v1433_v42  ;;  %1276 = vrot.lane.b32.xlu0 %v5235_v46, %s5428_s19 }
 0x8fc   :  { %5236 = vtanh.f32 %v1436_v50  ;;  %v4385_v15 = vmul.f32 -1.442695, %v1436_v50 }
 0x8ff   :  { %v1532_v51 = vpop.f32.mrf.mxu1 }
 0x900   :  { %v1603_v52 = vadd.f32 %v1602_v28, %v1532_v51  ;;  %v1707_v51 = vrot.slane %v5522_v5, 3 }
 0x901   :  { %v4852_v54 = vpop.f32.mrf.mxu1 }
 0x902   :  { %v1606_v55 = vadd.f32 %v5796_v62, %v1603_v52 }
 0x904   :  { %5238 = vtanh.f32 %v1606_v55  ;;  %v4388_v63 = vmul.f32 -1.442695, %v1606_v55 }
 0x905   :  { %5240 = vpow2.f32 %v4382_v59 }
 0x906   :  { %5242 = vpow2.f32 %v4385_v15 }
 0x909   :  { %v5237_v56 = vpop.eup %5236 }
 0x90a   :  { %1446 = vrot.lane.b32.xlu1 %v5237_v56, %s5428_s19 }
 0x911   :  { %v5239_v58 = vpop.eup %5238 }
 0x912   :  { %1616 = vrot.lane.b32.xlu0 %v5239_v58, %s5428_s19  ;;  %v5241_v61 = vpop.eup %5240 }
 0x913   :  { %v1270_v19 = vadd.f32 1.0, %v5241_v61  ;;  %v5243_v6 = vpop.eup %5242 }
 0x914   :  { %v1440_v8 = vadd.f32 1.0, %v5243_v6 }
 0x915   :  { %5244 = vrcp.f32 %v1270_v19 }
 0x916   :  { %5246 = vpow2.f32 %v4388_v63 }
 0x917   :  { %5248 = vrcp.f32 %v1440_v8 }
 0x922   :  { %v5245_v10 = vpop.eup %5244 }
 0x923   :  { %v5247_v14 = vpop.eup %5246  ;;  %v1274_v24 = vmul.f32 %v5245_v10, %v5805_v53 }
 0x924   :  { %v1610_v16 = vadd.f32 1.0, %v5247_v14  ;;  %v5249_v17 = vpop.eup %5248 }
 0x925   :  { %v1444_v1 = vmul.f32 %v5249_v17, %v5809_v57  ;;  %v1706_v57 = vrot.slane %v5517_v4, 4 }
 0x926   :  { %5250 = vrcp.f32 %v1610_v16 }
 0x927   :  { %v1708_v52 = vsel %vm163_vm1, %v1707_v51, %v1706_v57 }
 0x928   :  { %4878 = vmatmul.mubr.msk.f32.vlgmr.msra.gmra.mxu0 %vm165_vm2, %v1708_v52 }
 0x929   :  { %4881 = vmatpush3.msra.mxu0 %v5599_v33  ;;  %4888 = vmatprep.mubr.msk.f32.mxu0 %vm5427_vm3, %v5426_v2 }
 0x92a   :  { %4882 = vmatprep.subr.mxu0 %v5426_v2 }
 0x92b   :  { %4883 = vmatpush3.msra.mxu0 %v5605_v34 }
 0x92c   :  { %4884 = vmatprep.subr.mxu0 %v5426_v2 }
 0x92d   :  { %4885 = vmatpush3.msra.mxu0 %v5614_v35 }
 0x92e   :  { %4886 = vmatprep.subr.mxu0 %v5426_v2 }
 0x92f   :  { %4887 = vmatpush3.msra.mxu0 %v5621_v36 }
 0x930   :  { %4902 = vmatprep.subr.mxu0 %v5426_v2 }
 0x933   :  { %v5251_v22 = vpop.eup %5250 }
 0x934   :  { %v1614_v46 = vmul.f32 %v5251_v22, %v5813_v60 }
 0x96c   :  { %v1277_v11 = vpop.permute.xlu0 %1276 }
 0x96d   :  { %v1279_v13 = vmul.f32 %v5245_v10, %v1277_v11 }
 0x96f   :  { %1281 = vrot.lane.b32.xlu1 %v1279_v13, %s5429_s20 }
 0x97c   :  { %v1447_v18 = vpop.permute.xlu1 %1446 }
 0x97d   :  { %v1449_v21 = vmul.f32 %v5249_v17, %v1447_v18 }
 0x97f   :  { %1451 = vrot.lane.b32.xlu0 %v1449_v21, %s5429_s20 }
 0x984   :  { %v1617_v0 = vpop.permute.xlu0 %1616 }
 0x985   :  { %v1619_v23 = vmul.f32 %v5251_v22, %v1617_v0 }
 0x987   :  { %1621 = vrot.lane.b32.xlu1 %v1619_v23, %s5429_s20 }
 0x9e1   :  { %v1282_v25 = vpop.permute.xlu1 %1281 }
 0x9e2   :  { %v5898_v26 = vadd.f32 %v1282_v25, %v1274_v24 }
 0x9e4   :  { %5252 = vtanh.f32 %v5898_v26 }
 0x9f1   :  { %v5253_v27 = vpop.eup %5252  ;;  %v1452_v28 = vpop.permute.xlu0 %1451 }
 0x9f2   :  { %v5902_v42 = vadd.f32 %v1452_v28, %v1444_v1  ;;  %1287 = vrot.lane.b32.xlu0 %v5253_v27, %s5428_s19 }
 0x9f4   :  { %5254 = vtanh.f32 %v5902_v42 }
 0x9f9   :  { %v1622_v47 = vpop.permute.xlu1 %1621 }
 0x9fa   :  { %v5907_v48 = vadd.f32 %v1622_v47, %v1614_v46 }
 0x9fc   :  { %5256 = vtanh.f32 %v5907_v48 }
 0xa01   :  { %v5255_v53 = vpop.eup %5254 }
 0xa02   :  { %1457 = vrot.lane.b32.xlu1 %v5255_v53, %s5428_s19 }
 0xa09   :  { %v5257_v50 = vpop.eup %5256 }
 0xa0a   :  { %1627 = vrot.lane.b32.xlu0 %v5257_v50, %s5428_s19 }
 0xa64   :  { %v1288_v4 = vpop.permute.xlu0 %1287 }
 0xa65   :  { %v1290_v5 = vmul.f32 %v5245_v10, %v1288_v4 }
 0xa67   :  { %1632 = vrot.lane.b32.xlu1 %v1290_v5, %s5429_s20 }
 0xa74   :  { %v1458_v33 = vpop.permute.xlu1 %1457 }
 0xa75   :  { %v1460_v60 = vmul.f32 %v5249_v17, %v1458_v33 }
 0xa77   :  { %1807 = vrot.lane.b32.xlu0 %v1460_v60, %s5429_s20 }
 0xa7c   :  { %v1628_v54 = vpop.permute.xlu0 %1627 }
 0xa7d   :  { %v5928_v34 = vmul.f32 %v5251_v22, %v1628_v54 }
 0xa7f   :  { %1977 = vrot.lane.b32.xlu1 %v5928_v34, %s5429_s20 }
 0xad9   :  { %v1633_v35 = vpop.permute.xlu1 %1632 }
 0xada   :  { %4873 = vmatmul.mubr.msk.f32.vlgmr.msra.gmra.mxu1 %vm86_vm4, %v1633_v35 }
 0xadb   :  { %4892 = vmatpush3.msra.mxu1 %v5628_v37  ;;  %4899 = vmatprep.mubr.msk.f32.mxu1 %vm5427_vm3, %v5426_v2 }
 0xadc   :  { %4893 = vmatprep.subr.mxu1 %v5426_v2 }
 0xadd   :  { %4894 = vmatpush3.msra.mxu1 %v5636_v38 }
 0xade   :  { %4895 = vmatprep.subr.mxu1 %v5426_v2 }
 0xadf   :  { %4896 = vmatpush3.msra.mxu1 %v5645_v39  ;;  %v5984_v39 = vld [vmem:[%s6612_s2 + $0x10] sm:$0xff] }
 0xae0   :  { %4897 = vmatprep.subr.mxu1 %v5426_v2 }
 0xae1   :  { %4898 = vmatpush3.msra.mxu1 %v5652_v40  ;;  %v1777_v40 = vpop.f32.mrf.mxu0 }
 0xae2   :  { %4900 = vmatmul.mubr.msk.f32.vlgmr.msra.gmra.mxu1 %vm86_vm4, %v1633_v35  ;;  %4913 = vmatprep.subr.mxu1 %v5426_v2 }
 0xae3   :  { %4914 = vmatpush3.msra.mxu1 %v5712_v29  ;;  %4921 = vmatprep.mubr.msk.f32.mxu1 %vm5427_vm3, %v5426_v2  ;;  %v4879_v55 = vpop.f32.mrf.mxu0 }
 0xae4   :  { %4915 = vmatprep.subr.mxu1 %v5426_v2 }
 0xae5   :  { %4916 = vmatpush3.msra.mxu1 %v5720_v30 }
 0xae6   :  { %4917 = vmatprep.subr.mxu1 %v5426_v2 }
 0xae7   :  { %4918 = vmatpush3.msra.mxu1 %v5729_v31 }
 0xae8   :  { %4919 = vmatprep.subr.mxu1 %v5426_v2 }
 0xae9   :  { %4920 = vmatpush3.msra.mxu1 %v5736_v32  ;;  %v1808_v37 = vpop.permute.xlu0 %1807 }
 0xaea   :  { %4889 = vmatmul.mubr.msk.f32.vlgmr.msra.gmra.mxu0 %vm86_vm4, %v1808_v37  ;;  %4922 = vmatmul.mubr.msk.f32.vlgmr.msra.gmra.mxu1 %vm86_vm4, %v1808_v37 }
 0xaeb   :  { %4903 = vmatpush3.msra.mxu0 %v5743_v41  ;;  %4910 = vmatprep.mubr.msk.f32.mxu0 %vm5427_vm3, %v5426_v2 }
 0xaec   :  { %4904 = vmatprep.subr.mxu0 %v5426_v2  ;;  %4935 = vmatprep.subr.mxu1 %v5426_v2 }
 0xaed   :  { %4905 = vmatpush3.msra.mxu0 %v5751_v43  ;;  %4936 = vmatpush3.msk.msra.mxu1 %vm168_vm0, %v5512_v3  ;;  %v5975_v3 = vld [vmem:[%s6612_s2 + $0x18] sm:$0xff] }
 0xaee   :  { %4906 = vmatprep.subr.mxu0 %v5426_v2  ;;  %4937 = vmatprep.mubr.msk.f32.mxu1 %vm5427_vm3, %v5426_v2 }
 0xaef   :  { %4907 = vmatpush3.msra.mxu0 %v5760_v44  ;;  %4940 = vmatprep.subr.mxu1 %v5426_v2 }
 0xaf0   :  { %4908 = vmatprep.subr.mxu0 %v5426_v2 }
 0xaf1   :  { %v1978_v38 = vpop.permute.xlu1 %1977  ;;  %4909 = vmatpush3.msra.mxu0 %v5770_v45 }
 0xaf2   :  { %4911 = vmatmul.mubr.msk.f32.vlgmr.msra.gmra.mxu0 %vm86_vm4, %v1978_v38  ;;  %4924 = vmatprep.subr.mxu0 %v5426_v2 }
 0xaf3   :  { %4925 = vmatpush3.msra.mxu0 %v5975_v3  ;;  %4932 = vmatprep.mubr.msk.f32.mxu0 %vm5427_vm3, %v5426_v2 }
 0xaf4   :  { %4926 = vmatprep.subr.mxu0 %v5426_v2 }
 0xaf5   :  { %4927 = vmatpush3.msra.mxu0 %v5984_v39 }
 0xaf6   :  { %4928 = vmatprep.subr.mxu0 %v5426_v2 }
 0xaf7   :  { %4929 = vmatpush3.msra.mxu0 %v5532_v7 }
 0xaf8   :  { %4930 = vmatprep.subr.mxu0 %v5426_v2 }
 0xaf9   :  { %4931 = vmatpush3.msra.mxu0 %v5546_v9 }
 0xafa   :  { %4951 = vmatprep.subr.mxu0 %v5426_v2 }
 0xb9a   :  { %v1702_v56 = vpop.f32.mrf.mxu1 }
 0xb9b   :  { %v1778_v58 = vadd.f32 %v1777_v40, %v1702_v56 }
 0xb9c   :  { %v4874_v59 = vpop.f32.mrf.mxu1 }
 0xb9d   :  { %v1781_v15 = vadd.f32 %v5577_v12, %v1778_v58 }
 0xb9f   :  { %5258 = vtanh.f32 %v1781_v15  ;;  %v4392_v21 = vmul.f32 -1.442695, %v1781_v15 }
 0xba2   :  { %v1947_v61 = vpop.f32.mrf.mxu1 }
 0xba4   :  { %v4901_v19 = vpop.f32.mrf.mxu1 }
 0xba5   :  { %v6033_v19 = vld [vmem:[%s6615_s5 + $0x18] sm:$0xff] }
 0xbaa   :  { %v1877_v63 = vpop.f32.mrf.mxu0  ;;  %v2117_v6 = vpop.f32.mrf.mxu1 }
 0xbab   :  { %v1948_v8 = vadd.f32 %v1947_v61, %v1877_v63  ;;  %v6042_v63 = vld [vmem:[%s6615_s5 + $0x10] sm:$0xff] }
 0xbac   :  { %v5259_v7 = vpop.eup %5258  ;;  %v4890_v10 = vpop.f32.mrf.mxu0 }
 0xbad   :  { %v4923_v11 = vpop.f32.mrf.mxu1  ;;  %v1951_v9 = vadd.f32 %v5668_v49, %v1948_v8  ;;  %1791 = vrot.lane.b32.xlu0 %v5259_v7, %s5428_s19 }
 0xbaf   :  { %5260 = vtanh.f32 %v1951_v9  ;;  %v4395_v22 = vmul.f32 -1.442695, %v1951_v9 }
 0xbb2   :  { %v2047_v13 = vpop.f32.mrf.mxu0 }
 0xbb3   :  { %v2118_v14 = vadd.f32 %v2117_v6, %v2047_v13  ;;  %v6049_v6 = vld [vmem:[%s6615_s5 + $0x8] sm:$0xff] }
 0xbb4   :  { %v4912_v16 = vpop.f32.mrf.mxu0 }
 0xbb5   :  { %v2121_v17 = vadd.f32 %v5796_v62, %v2118_v14  ;;  %v6074_v16 = vld [vmem:[%s6614_s4 + $0x10] sm:$0xff] }
 0xbb7   :  { %5262 = vtanh.f32 %v2121_v17  ;;  %v4398_v23 = vmul.f32 -1.442695, %v2121_v17  ;;  %v6081_v17 = vld [vmem:[%s6614_s4 + $0x8] sm:$0xff] }
 0xbb8   :  { %5264 = vpow2.f32 %v4392_v21 }
 0xbb9   :  { %5266 = vpow2.f32 %v4395_v22  ;;  %v6149_v22 = vld [vmem:[%s6613_s3] ss:$0 sm:$0xff] }
 0xbbc   :  { %v5261_v12 = vpop.eup %5260 }
 0xbbd   :  { %1961 = vrot.lane.b32.xlu1 %v5261_v12, %s5428_s19  ;;  %v6088_v12 = vld [vmem:[%s6614_s4] sm:$0xff] }
 0xbc4   :  { %v5263_v18 = vpop.eup %5262 }
 0xbc5   :  { %2131 = vrot.lane.b32.xlu0 %v5263_v18, %s5428_s19  ;;  %v5265_v0 = vpop.eup %5264 }
 0xbc6   :  { %v1785_v49 = vadd.f32 1.0, %v5265_v0  ;;  %v5267_v24 = vpop.eup %5266 }
 0xbc7   :  { %v1955_v25 = vadd.f32 1.0, %v5267_v24 }
 0xbc8   :  { %5268 = vrcp.f32 %v1785_v49 }
 0xbc9   :  { %5270 = vpow2.f32 %v4398_v23 }
 0xbca   :  { %5272 = vrcp.f32 %v1955_v25 }
 0xbd5   :  { %v5269_v1 = vpop.eup %5268 }
 0xbd6   :  { %v5271_v46 = vpop.eup %5270  ;;  %v1789_v5 = vmul.f32 %v5269_v1, %v5898_v26 }
 0xbd7   :  { %v2125_v47 = vadd.f32 1.0, %v5271_v46  ;;  %v5273_v53 = vpop.eup %5272 }
 0xbd8   :  { %v1959_v54 = vmul.f32 %v5273_v53, %v5902_v42  ;;  %v6019_v42 = vld [vmem:[%s6610_s0] sm:$0xff] }
 0xbd9   :  { %5274 = vrcp.f32 %v2125_v47  ;;  %v2221_v59 = vrot.slane %v6019_v42, 5  ;;  %v6155_v47 = vld [vmem:[%s6616_s6] ss:$0 sm:$0xff] }
 0xbe6   :  { %v5275_v51 = vpop.eup %5274 }
 0xbe7   :  { %v2129_v40 = vmul.f32 %v5275_v51, %v5907_v48  ;;  %v6025_v48 = vld [vmem:[%s6610_s0 + $0x8] sm:$0xff] }
 0xbe8   :  { %v2222_v15 = vrot.slane %v6025_v48, 4 }
 0xbea   :  { %v2223_v61 = vsel %vm163_vm1, %v2222_v15, %v2221_v59 }
 0xbeb   :  { %4938 = vmatmul.mubr.msk.f32.vlgmr.msra.gmra.mxu1 %vm165_vm2, %v2223_v61 }
 0xbec   :  { %4941 = vmatpush3.msra.mxu1 %v6033_v19  ;;  %4948 = vmatprep.mubr.msk.f32.mxu1 %vm5427_vm3, %v5426_v2 }
 0xbed   :  { %4942 = vmatprep.subr.mxu1 %v5426_v2 }
 0xbee   :  { %4943 = vmatpush3.msra.mxu1 %v6042_v63 }
 0xbef   :  { %4944 = vmatprep.subr.mxu1 %v5426_v2 }
 0xbf0   :  { %4945 = vmatpush3.msra.mxu1 %v6049_v6 }
 0xbf1   :  { %4946 = vmatprep.subr.mxu1 %v5426_v2 }
 0xbf2   :  { %4947 = vmatpush3.msra.mxu1 %v5621_v36  ;;  %v6065_v36 = vld [vmem:[%s6614_s4 + $0x18] sm:$0xff] }
 0xbf3   :  { %4962 = vmatprep.subr.mxu1 %v5426_v2 }
 0xc1f   :  { %v1792_v27 = vpop.permute.xlu0 %1791 }
 0xc20   :  { %v1794_v28 = vmul.f32 %v5269_v1, %v1792_v27 }
 0xc22   :  { %1796 = vrot.lane.b32.xlu1 %v1794_v28, %s5429_s20 }
 0xc2f   :  { %v1962_v50 = vpop.permute.xlu1 %1961 }
 0xc30   :  { %v1964_v57 = vmul.f32 %v5273_v53, %v1962_v50 }
 0xc32   :  { %1966 = vrot.lane.b32.xlu0 %v1964_v57, %s5429_s20 }
 0xc37   :  { %v2132_v52 = vpop.permute.xlu0 %2131 }
 0xc38   :  { %v2134_v4 = vmul.f32 %v5275_v51, %v2132_v52 }
 0xc3a   :  { %2136 = vrot.lane.b32.xlu1 %v2134_v4, %s5429_s20 }
 0xc94   :  { %v1797_v33 = vpop.permute.xlu1 %1796 }
 0xc95   :  { %v6002_v60 = vadd.f32 %v1797_v33, %v1789_v5 }
 0xc97   :  { %5276 = vtanh.f32 %v6002_v60 }
 0xca4   :  { %v5277_v35 = vpop.eup %5276  ;;  %v1967_v37 = vpop.permute.xlu0 %1966 }
 0xca5   :  { %v6006_v38 = vadd.f32 %v1967_v37, %v1959_v54  ;;  %1802 = vrot.lane.b32.xlu0 %v5277_v35, %s5428_s19 }
 0xca7   :  { %5278 = vtanh.f32 %v6006_v38 }
 0xcac   :  { %v2137_v55 = vpop.permute.xlu1 %2136 }
 0xcad   :  { %v6011_v56 = vadd.f32 %v2137_v55, %v2129_v40 }
 0xcaf   :  { %5280 = vtanh.f32 %v6011_v56 }
 0xcb4   :  { %v5279_v26 = vpop.eup %5278 }
 0xcb5   :  { %1972 = vrot.lane.b32.xlu1 %v5279_v26, %s5428_s19 }
 0xcbc   :  { %v5281_v58 = vpop.eup %5280 }
 0xcbd   :  { %2142 = vrot.lane.b32.xlu0 %v5281_v58, %s5428_s19 }
 0xd17   :  { %v1803_v8 = vpop.permute.xlu0 %1802 }
 0xd18   :  { %v1805_v7 = vmul.f32 %v5269_v1, %v1803_v8 }
 0xd1a   :  { %2147 = vrot.lane.b32.xlu1 %v1805_v7, %s5429_s20 }
 0xd27   :  { %v1973_v10 = vpop.permute.xlu1 %1972 }
 0xd28   :  { %v1975_v11 = vmul.f32 %v5273_v53, %v1973_v10 }
 0xd2a   :  { %2322 = vrot.lane.b32.xlu0 %v1975_v11, %s5429_s20 }
 0xd2f   :  { %v2143_v9 = vpop.permute.xlu0 %2142 }
 0xd30   :  { %v6057_v13 = vmul.f32 %v5275_v51, %v2143_v9 }
 0xd32   :  { %2492 = vrot.lane.b32.xlu1 %v6057_v13, %s5429_s20 }
 0xd8c   :  { %v2148_v14 = vpop.permute.xlu1 %2147 }
 0xd8d   :  { %4933 = vmatmul.mubr.msk.f32.vlgmr.msra.gmra.mxu0 %vm86_vm4, %v2148_v14 }
 0xd8e   :  { %4952 = vmatpush3.msra.mxu0 %v6065_v36  ;;  %4959 = vmatprep.mubr.msk.f32.mxu0 %vm5427_vm3, %v5426_v2 }
 0xd8f   :  { %4953 = vmatprep.subr.mxu0 %v5426_v2 }
 0xd90   :  { %4954 = vmatpush3.msra.mxu0 %v6074_v16 }
 0xd91   :  { %4955 = vmatprep.subr.mxu0 %v5426_v2 }
 0xd92   :  { %4956 = vmatpush3.msra.mxu0 %v6081_v17 }
 0xd93   :  { %4957 = vmatprep.subr.mxu0 %v5426_v2 }
 0xd94   :  { %4958 = vmatpush3.msra.mxu0 %v6088_v12 }
 0xd95   :  { %4960 = vmatmul.mubr.msk.f32.vlgmr.msra.gmra.mxu0 %vm86_vm4, %v2148_v14  ;;  %4973 = vmatprep.subr.mxu0 %v5426_v2 }
 0xd96   :  { %4974 = vmatpush3.msra.mxu0 %v5712_v29  ;;  %4981 = vmatprep.mubr.msk.f32.mxu0 %vm5427_vm3, %v5426_v2  ;;  %v6113_v29 = vld [vmem:[%s6611_s1] sm:$0xf] }
 0xd97   :  { %4975 = vmatprep.subr.mxu0 %v5426_v2 }
 0xd98   :  { %4976 = vmatpush3.msra.mxu0 %v5720_v30 }
 0xd99   :  { %4977 = vmatprep.subr.mxu0 %v5426_v2 }
 0xd9a   :  { %4978 = vmatpush3.msra.mxu0 %v5729_v31  ;;  %v6135_v31 = vld [vmem:[%s6612_s2 + $0x8] sm:$0xff] }
 0xd9b   :  { %4979 = vmatprep.subr.mxu0 %v5426_v2 }
 0xd9c   :  { %4980 = vmatpush3.msra.mxu0 %v5736_v32  ;;  %v2323_v18 = vpop.permute.xlu0 %2322  ;;  %v6142_v32 = vld [vmem:[%s6612_s2] sm:$0xff] }
 0xd9d   :  { %4949 = vmatmul.mubr.msk.f32.vlgmr.msra.gmra.mxu1 %vm86_vm4, %v2323_v18  ;;  %4982 = vmatmul.mubr.msk.f32.vlgmr.msra.gmra.mxu0 %vm86_vm4, %v2323_v18 }
 0xd9e   :  { %4963 = vmatpush3.msra.mxu1 %v5743_v41  ;;  %4970 = vmatprep.mubr.msk.f32.mxu1 %vm5427_vm3, %v5426_v2  ;;  %v2292_v41 = vpop.f32.mrf.mxu1 }
 0xd9f   :  { %4964 = vmatprep.subr.mxu1 %v5426_v2  ;;  %4995 = vmatprep.subr.mxu0 %v5426_v2 }
 0xda0   :  { %4965 = vmatpush3.msra.mxu1 %v5751_v43  ;;  %4996 = vmatpush3.msk.msra.mxu0 %vm168_vm0, %v6113_v29  ;;  %v4939_v43 = vpop.f32.mrf.mxu1 }
 0xda1   :  { %4966 = vmatprep.subr.mxu1 %v5426_v2  ;;  %4997 = vmatprep.mubr.msk.f32.mxu0 %vm5427_vm3, %v5426_v2 }
 0xda2   :  { %4967 = vmatpush3.msra.mxu1 %v5760_v44  ;;  %5000 = vmatprep.subr.mxu0 %v5426_v2 }
 0xda3   :  { %4968 = vmatprep.subr.mxu1 %v5426_v2 }
 0xda4   :  { %v2493_v30 = vpop.permute.xlu1 %2492  ;;  %4969 = vmatpush3.msra.mxu1 %v5770_v45 }
 0xda5   :  { %4971 = vmatmul.mubr.msk.f32.vlgmr.msra.gmra.mxu1 %vm86_vm4, %v2493_v30  ;;  %4984 = vmatprep.subr.mxu1 %v5426_v2 }
 0xda6   :  { %4985 = vmatpush3.msra.mxu1 %v5975_v3  ;;  %4992 = vmatprep.mubr.msk.f32.mxu1 %vm5427_vm3, %v5426_v2 }
 0xda7   :  { %4986 = vmatprep.subr.mxu1 %v5426_v2 }
 0xda8   :  { %4987 = vmatpush3.msra.mxu1 %v5984_v39 }
 0xda9   :  { %4988 = vmatprep.subr.mxu1 %v5426_v2 }
 0xdaa   :  { %4989 = vmatpush3.msra.mxu1 %v6135_v31 }
 0xdab   :  { %4990 = vmatprep.subr.mxu1 %v5426_v2 }
 0xdac   :  { %4991 = vmatpush3.msra.mxu1 %v6142_v32 }
 0xdad   :  { %5011 = vmatprep.subr.mxu1 %v5426_v2 }
 0xe4d   :  { %v2217_v44 = vpop.f32.mrf.mxu0 }
 0xe4e   :  { %v2293_v45 = vadd.f32 %v2292_v41, %v2217_v44 }
 0xe4f   :  { %v4934_v21 = vpop.f32.mrf.mxu0 }
 0xe50   :  { %v2296_v0 = vadd.f32 %v6149_v22, %v2293_v45 }
 0xe52   :  { %5282 = vtanh.f32 %v2296_v0  ;;  %v4402_v33 = vmul.f32 -1.442695, %v2296_v0 }
 0xe55   :  { %v2462_v49 = vpop.f32.mrf.mxu0 }
 0xe57   :  { %v4961_v23 = vpop.f32.mrf.mxu0 }
 0xe5d   :  { %v2392_v24 = vpop.f32.mrf.mxu1  ;;  %v2632_v25 = vpop.f32.mrf.mxu0 }
 0xe5e   :  { %v2463_v1 = vadd.f32 %v2462_v49, %v2392_v24 }
 0xe5f   :  { %v5283_v27 = vpop.eup %5282  ;;  %v4950_v28 = vpop.f32.mrf.mxu1 }
 0xe60   :  { %v4983_v46 = vpop.f32.mrf.mxu0  ;;  %v2466_v53 = vadd.f32 %v6155_v47, %v2463_v1  ;;  %2306 = vrot.lane.b32.xlu0 %v5283_v27, %s5428_s19 }
 0xe62   :  { %5284 = vtanh.f32 %v2466_v53  ;;  %v4405_v54 = vmul.f32 -1.442695, %v2466_v53 }
 0xe65   :  { %v2562_v50 = vpop.f32.mrf.mxu1 }
 0xe66   :  { %v2633_v57 = vadd.f32 %v2632_v25, %v2562_v50  ;;  %v2737_v25 = vrot.slane %v6025_v48, 5 }
 0xe67   :  { %v4972_v51 = vpop.f32.mrf.mxu1 }
 0xe68   :  { %v2636_v52 = vadd.f32 %v5796_v62, %v2633_v57 }
 0xe6a   :  { %5286 = vtanh.f32 %v2636_v52  ;;  %v4408_v40 = vmul.f32 -1.442695, %v2636_v52  ;;  %v6220_v52 = vld [vmem:[%s6617_s7 + $0x18] sm:$0xff] }
 0xe6b   :  { %5288 = vpow2.f32 %v4402_v33  ;;  %v6243_v33 = vld [vmem:[%s6617_s7] sm:$0xff] }
 0xe6c   :  { %5290 = vpow2.f32 %v4405_v54 }
 0xe6f   :  { %v5285_v4 = vpop.eup %5284 }
 0xe70   :  { %2476 = vrot.lane.b32.xlu1 %v5285_v4, %s5428_s19  ;;  %v6229_v4 = vld [vmem:[%s6617_s7 + $0x10] sm:$0xff] }
 0xe77   :  { %v5287_v5 = vpop.eup %5286 }
 0xe78   :  { %2646 = vrot.lane.b32.xlu0 %v5287_v5, %s5428_s19  ;;  %v5289_v35 = vpop.eup %5288  ;;  %v6236_v5 = vld [vmem:[%s6617_s7 + $0x8] sm:$0xff] }
 0xe79   :  { %v2300_v37 = vadd.f32 1.0, %v5289_v35  ;;  %v5291_v55 = vpop.eup %5290  ;;  %v6251_v35 = vld [vmem:[%s6618_s8 + $0x18] sm:$0xff] }
 0xe7a   :  { %v2470_v26 = vadd.f32 1.0, %v5291_v55 }
 0xe7b   :  { %5292 = vrcp.f32 %v2300_v37  ;;  %v6261_v37 = vld [vmem:[%s6618_s8 + $0x10] sm:$0xff] }
 0xe7c   :  { %5294 = vpow2.f32 %v4408_v40  ;;  %v6272_v40 = vld [vmem:[%s6618_s8 + $0x8] sm:$0xff] }
 0xe7d   :  { %5296 = vrcp.f32 %v2470_v26 }
 0xe88   :  { %v5293_v58 = vpop.eup %5292 }
 0xe89   :  { %v5295_v15 = vpop.eup %5294  ;;  %v2304_v18 = vmul.f32 %v5293_v58, %v6002_v60 }
 0xe8a   :  { %v2640_v61 = vadd.f32 1.0, %v5295_v15  ;;  %v5297_v8 = vpop.eup %5296 }
 0xe8b   :  { %v2474_v43 = vmul.f32 %v5297_v8, %v6006_v38  ;;  %v2736_v38 = vrot.slane %v6019_v42, 6 }
 0xe8c   :  { %5298 = vrcp.f32 %v2640_v61 }
 0xe8d   :  { %v2738_v1 = vsel %vm163_vm1, %v2737_v25, %v2736_v38 }
 0xe8e   :  { %4998 = vmatmul.mubr.msk.f32.vlgmr.msra.gmra.mxu0 %vm165_vm2, %v2738_v1 }
 0xe8f   :  { %5001 = vmatpush3.msra.mxu0 %v6033_v19  ;;  %5008 = vmatprep.mubr.msk.f32.mxu0 %vm5427_vm3, %v5426_v2 }
 0xe90   :  { %5002 = vmatprep.subr.mxu0 %v5426_v2 }
 0xe91   :  { %5003 = vmatpush3.msra.mxu0 %v6042_v63 }
 0xe92   :  { %5004 = vmatprep.subr.mxu0 %v5426_v2 }
 0xe93   :  { %5005 = vmatpush3.msra.mxu0 %v6049_v6 }
 0xe94   :  { %5006 = vmatprep.subr.mxu0 %v5426_v2 }
 0xe99   :  { %v5299_v11 = vpop.eup %5298 }
 0xe9a   :  { %v2644_v0 = vmul.f32 %v5299_v11, %v6011_v56  ;;  %v6195_v56 = vld [vmem:[%s6615_s5] sm:$0xff] }
 0xe9b   :  { %5007 = vmatpush3.msra.mxu0 %v6195_v56 }
 0xe9c   :  { %5022 = vmatprep.subr.mxu0 %v5426_v2 }
 0xed2   :  { %v2307_v62 = vpop.permute.xlu0 %2306 }
 0xed3   :  { %v2309_v59 = vmul.f32 %v5293_v58, %v2307_v62 }
 0xed5   :  { %2311 = vrot.lane.b32.xlu1 %v2309_v59, %s5429_s20 }
 0xee2   :  { %v2477_v7 = vpop.permute.xlu1 %2476 }
 0xee3   :  { %v2479_v10 = vmul.f32 %v5297_v8, %v2477_v7 }
 0xee5   :  { %2481 = vrot.lane.b32.xlu0 %v2479_v10, %s5429_s20 }
 0xeea   :  { %v2647_v9 = vpop.permute.xlu0 %2646 }
 0xeeb   :  { %v2649_v14 = vmul.f32 %v5299_v11, %v2647_v9 }
 0xeed   :  { %2651 = vrot.lane.b32.xlu1 %v2649_v14, %s5429_s20 }
 0xf47   :  { %v2312_v30 = vpop.permute.xlu1 %2311 }
 0xf48   :  { %v6166_v41 = vadd.f32 %v2312_v30, %v2304_v18 }
 0xf4a   :  { %5300 = vtanh.f32 %v6166_v41 }
 0xf4e   :  { %v2807_v26 = vpop.f32.mrf.mxu0 }
 0xf57   :  { %v5301_v44 = vpop.eup %5300  ;;  %v2482_v45 = vpop.permute.xlu0 %2481 }
 0xf58   :  { %v6170_v21 = vadd.f32 %v2482_v45, %v2474_v43  ;;  %2317 = vrot.lane.b32.xlu0 %v5301_v44, %s5428_s19  ;;  %v6301_v43 = vld [vmem:[%s6619_s9] ss:$0 sm:$0xff] }
 0xf5a   :  { %5302 = vtanh.f32 %v6170_v21 }
 0xf5f   :  { %v2652_v49 = vpop.permute.xlu1 %2651 }
 0xf60   :  { %v6175_v23 = vadd.f32 %v2652_v49, %v2644_v0 }
 0xf62   :  { %5304 = vtanh.f32 %v6175_v23 }
 0xf67   :  { %v5303_v60 = vpop.eup %5302 }
 0xf68   :  { %2487 = vrot.lane.b32.xlu1 %v5303_v60, %s5428_s19 }
 0xf6f   :  { %v5305_v24 = vpop.eup %5304 }
 0xf70   :  { %2657 = vrot.lane.b32.xlu0 %v5305_v24, %s5428_s19 }
 0xfca   :  { %v2318_v27 = vpop.permute.xlu0 %2317 }
 0xfcb   :  { %v2320_v28 = vmul.f32 %v5293_v58, %v2318_v27  ;;  %v4999_v58 = vpop.f32.mrf.mxu0 }
 0xfcd   :  { %2662 = vrot.lane.b32.xlu1 %v2320_v28, %s5429_s20 }
 0xfda   :  { %v2488_v46 = vpop.permute.xlu1 %2487 }
 0xfdb   :  { %v2490_v53 = vmul.f32 %v5297_v8, %v2488_v46 }
 0xfdd   :  { %2837 = vrot.lane.b32.xlu0 %v2490_v53, %s5429_s20 }
 0xfe2   :  { %v2658_v50 = vpop.permute.xlu0 %2657 }
 0xfe3   :  { %v6201_v57 = vmul.f32 %v5299_v11, %v2658_v50 }
 0xfe5   :  { %3007 = vrot.lane.b32.xlu1 %v6201_v57, %s5429_s20 }
0x103f   :  { %v2663_v51 = vpop.permute.xlu1 %2662 }
0x1040   :  { %4993 = vmatmul.mubr.msk.f32.vlgmr.msra.gmra.mxu1 %vm86_vm4, %v2663_v51 }
0x1041   :  { %5012 = vmatpush3.msra.mxu1 %v6065_v36  ;;  %5019 = vmatprep.mubr.msk.f32.mxu1 %vm5427_vm3, %v5426_v2 }
0x1042   :  { %5013 = vmatprep.subr.mxu1 %v5426_v2 }
0x1043   :  { %5014 = vmatpush3.msra.mxu1 %v6074_v16 }
0x1044   :  { %5015 = vmatprep.subr.mxu1 %v5426_v2 }
0x1045   :  { %5016 = vmatpush3.msra.mxu1 %v6081_v17 }
0x1046   :  { %5017 = vmatprep.subr.mxu1 %v5426_v2 }
0x1047   :  { %5018 = vmatpush3.msra.mxu1 %v6088_v12 }
0x1048   :  { %5020 = vmatmul.mubr.msk.f32.vlgmr.msra.gmra.mxu1 %vm86_vm4, %v2663_v51  ;;  %5033 = vmatprep.subr.mxu1 %v5426_v2 }
0x1049   :  { %5034 = vmatpush3.msra.mxu1 %v6220_v52  ;;  %5041 = vmatprep.mubr.msk.f32.mxu1 %vm5427_vm3, %v5426_v2 }
0x104a   :  { %5035 = vmatprep.subr.mxu1 %v5426_v2 }
0x104b   :  { %5036 = vmatpush3.msra.mxu1 %v6229_v4 }
0x104c   :  { %5037 = vmatprep.subr.mxu1 %v5426_v2 }
0x104d   :  { %5038 = vmatpush3.msra.mxu1 %v6236_v5 }
0x104e   :  { %5039 = vmatprep.subr.mxu1 %v5426_v2 }
0x104f   :  { %5040 = vmatpush3.msra.mxu1 %v6243_v33  ;;  %v2838_v54 = vpop.permute.xlu0 %2837 }
0x1050   :  { %5009 = vmatmul.mubr.msk.f32.vlgmr.msra.gmra.mxu0 %vm86_vm4, %v2838_v54  ;;  %5042 = vmatmul.mubr.msk.f32.vlgmr.msra.gmra.mxu1 %vm86_vm4, %v2838_v54 }
0x1051   :  { %5023 = vmatpush3.msra.mxu0 %v6251_v35  ;;  %5030 = vmatprep.mubr.msk.f32.mxu0 %vm5427_vm3, %v5426_v2 }
0x1052   :  { %5024 = vmatprep.subr.mxu0 %v5426_v2  ;;  %5055 = vmatprep.subr.mxu1 %v5426_v2 }
0x1053   :  { %5025 = vmatpush3.msra.mxu0 %v6261_v37  ;;  %5056 = vmatpush3.msk.msra.mxu1 %vm168_vm0, %v6113_v29  ;;  %v6280_v29 = vld [vmem:[%s6618_s8] sm:$0xff] }
0x1054   :  { %5026 = vmatprep.subr.mxu0 %v5426_v2  ;;  %5057 = vmatprep.mubr.msk.f32.mxu1 %vm5427_vm3, %v5426_v2 }
0x1055   :  { %5027 = vmatpush3.msra.mxu0 %v6272_v40  ;;  %5060 = vmatprep.subr.mxu1 %v5426_v2 }
0x1056   :  { %5028 = vmatprep.subr.mxu0 %v5426_v2 }
0x1057   :  { %v3008_v55 = vpop.permute.xlu1 %3007  ;;  %5029 = vmatpush3.msra.mxu0 %v6280_v29 }
0x1058   :  { %5031 = vmatmul.mubr.msk.f32.vlgmr.msra.gmra.mxu0 %vm86_vm4, %v3008_v55  ;;  %5044 = vmatprep.subr.mxu0 %v5426_v2 }
0x1059   :  { %5045 = vmatpush3.msra.mxu0 %v5975_v3  ;;  %5052 = vmatprep.mubr.msk.f32.mxu0 %vm5427_vm3, %v5426_v2 }
0x105a   :  { %5046 = vmatprep.subr.mxu0 %v5426_v2 }
0x105b   :  { %5047 = vmatpush3.msra.mxu0 %v5984_v39 }
0x105c   :  { %5048 = vmatprep.subr.mxu0 %v5426_v2 }
0x105d   :  { %5049 = vmatpush3.msra.mxu0 %v6135_v31 }
0x105e   :  { %5050 = vmatprep.subr.mxu0 %v5426_v2 }
0x105f   :  { %5051 = vmatpush3.msra.mxu0 %v6142_v32 }
0x1060   :  { %5071 = vmatprep.subr.mxu0 %v5426_v2 }
0x1100   :  { %v2732_v3 = vpop.f32.mrf.mxu1 }
0x1101   :  { %v2808_v62 = vadd.f32 %v2807_v26, %v2732_v3 }
0x1102   :  { %v4994_v59 = vpop.f32.mrf.mxu1 }
0x1103   :  { %v2811_v15 = vadd.f32 %v6149_v22, %v2808_v62 }
0x1105   :  { %5306 = vtanh.f32 %v2811_v15  ;;  %v4412_v49 = vmul.f32 -1.442695, %v2811_v15 }
0x1108   :  { %v2977_v61 = vpop.f32.mrf.mxu1 }
0x110a   :  { %v5021_v39 = vpop.f32.mrf.mxu1 }
0x1110   :  { %v2907_v8 = vpop.f32.mrf.mxu0  ;;  %v3147_v7 = vpop.f32.mrf.mxu1 }
0x1111   :  { %v2978_v10 = vadd.f32 %v2977_v61, %v2907_v8 }
0x1112   :  { %v5307_v31 = vpop.eup %5306  ;;  %v5010_v11 = vpop.f32.mrf.mxu0 }
0x1113   :  { %v5043_v9 = vpop.f32.mrf.mxu1  ;;  %v2981_v32 = vadd.f32 %v6155_v47, %v2978_v10  ;;  %2821 = vrot.lane.b32.xlu0 %v5307_v31, %s5428_s19 }
0x1115   :  { %5308 = vtanh.f32 %v2981_v32  ;;  %v4415_v60 = vmul.f32 -1.442695, %v2981_v32 }
0x1118   :  { %v3077_v14 = vpop.f32.mrf.mxu0 }
0x1119   :  { %v3148_v18 = vadd.f32 %v3147_v7, %v3077_v14  ;;  %v3252_v14 = vrot.slane %v6025_v48, 6 }
0x111a   :  { %v5032_v30 = vpop.f32.mrf.mxu0 }
0x111b   :  { %v3151_v44 = vadd.f32 %v6301_v43, %v3148_v18 }
0x111d   :  { %5310 = vtanh.f32 %v3151_v44  ;;  %v4418_v25 = vmul.f32 -1.442695, %v3151_v44 }
0x111e   :  { %5312 = vpow2.f32 %v4412_v49 }
0x111f   :  { %5314 = vpow2.f32 %v4415_v60 }
0x1122   :  { %v5309_v45 = vpop.eup %5308 }
0x1123   :  { %2991 = vrot.lane.b32.xlu1 %v5309_v45, %s5428_s19 }
0x112a   :  { %v5311_v0 = vpop.eup %5310 }
0x112b   :  { %3161 = vrot.lane.b32.xlu0 %v5311_v0, %s5428_s19  ;;  %v5313_v24 = vpop.eup %5312 }
0x112c   :  { %v2815_v38 = vadd.f32 1.0, %v5313_v24  ;;  %v5315_v1 = vpop.eup %5314 }
0x112d   :  { %v2985_v27 = vadd.f32 1.0, %v5315_v1 }
0x112e   :  { %5316 = vrcp.f32 %v2815_v38 }
0x112f   :  { %5318 = vpow2.f32 %v4418_v25 }
0x1130   :  { %5320 = vrcp.f32 %v2985_v27 }
0x113b   :  { %v5317_v28 = vpop.eup %5316 }
0x113c   :  { %v5319_v50 = vpop.eup %5318  ;;  %v2819_v59 = vmul.f32 %v5317_v28, %v6166_v41 }
0x113d   :  { %v3155_v51 = vadd.f32 1.0, %v5319_v50  ;;  %v5321_v54 = vpop.eup %5320 }
0x113e   :  { %v2989_v39 = vmul.f32 %v5321_v54, %v6170_v21  ;;  %v3251_v21 = vrot.slane %v6019_v42, 7 }
0x113f   :  { %5322 = vrcp.f32 %v3155_v51 }
0x1140   :  { %v3253_v18 = vsel %vm163_vm1, %v3252_v14, %v3251_v21 }
0x1141   :  { %5058 = vmatmul.mubr.msk.f32.vlgmr.msra.gmra.mxu1 %vm165_vm2, %v3253_v18 }
0x1142   :  { %5061 = vmatpush3.msra.mxu1 %v6033_v19  ;;  %5068 = vmatprep.mubr.msk.f32.mxu1 %vm5427_vm3, %v5426_v2 }
0x1143   :  { %5062 = vmatprep.subr.mxu1 %v5426_v2 }
0x1144   :  { %5063 = vmatpush3.msra.mxu1 %v6042_v63 }
0x1145   :  { %5064 = vmatprep.subr.mxu1 %v5426_v2 }
0x1146   :  { %5065 = vmatpush3.msra.mxu1 %v6049_v6 }
0x1147   :  { %5066 = vmatprep.subr.mxu1 %v5426_v2 }
0x1148   :  { %5067 = vmatpush3.msra.mxu1 %v6195_v56 }
0x1149   :  { %5082 = vmatprep.subr.mxu1 %v5426_v2 }
0x114c   :  { %v5323_v58 = vpop.eup %5322 }
0x114d   :  { %v3159_v31 = vmul.f32 %v5323_v58, %v6175_v23 }
0x1185   :  { %v2822_v46 = vpop.permute.xlu0 %2821 }
0x1186   :  { %v2824_v53 = vmul.f32 %v5317_v28, %v2822_v46 }
0x1188   :  { %2826 = vrot.lane.b32.xlu1 %v2824_v53, %s5429_s20 }
0x1195   :  { %v2992_v55 = vpop.permute.xlu1 %2991 }
0x1196   :  { %v2994_v26 = vmul.f32 %v5321_v54, %v2992_v55 }
0x1198   :  { %2996 = vrot.lane.b32.xlu0 %v2994_v26, %s5429_s20 }
0x119d   :  { %v3162_v3 = vpop.permute.xlu0 %3161 }
0x119e   :  { %v3164_v62 = vmul.f32 %v5323_v58, %v3162_v3 }
0x11a0   :  { %3166 = vrot.lane.b32.xlu1 %v3164_v62, %s5429_s20 }
0x11fa   :  { %v2827_v15 = vpop.permute.xlu1 %2826 }
0x11fb   :  { %v6310_v61 = vadd.f32 %v2827_v15, %v2819_v59 }
0x11fd   :  { %5324 = vtanh.f32 %v6310_v61 }
0x120a   :  { %v5325_v8 = vpop.eup %5324  ;;  %v2997_v7 = vpop.permute.xlu0 %2996 }
0x120b   :  { %v6314_v10 = vadd.f32 %v2997_v7, %v2989_v39  ;;  %2832 = vrot.lane.b32.xlu0 %v5325_v8, %s5428_s19 }
0x120d   :  { %5326 = vtanh.f32 %v6314_v10 }
0x1212   :  { %v3167_v11 = vpop.permute.xlu1 %3166 }
0x1213   :  { %v6319_v9 = vadd.f32 %v3167_v11, %v3159_v31 }
0x1215   :  { %5328 = vtanh.f32 %v6319_v9 }
0x121a   :  { %v5327_v41 = vpop.eup %5326 }
0x121b   :  { %3002 = vrot.lane.b32.xlu1 %v5327_v41, %s5428_s19 }
0x1222   :  { %v5329_v32 = vpop.eup %5328 }
0x1223   :  { %3172 = vrot.lane.b32.xlu0 %v5329_v32, %s5428_s19 }
0x127d   :  { %v2833_v42 = vpop.permute.xlu0 %2832 }
0x127e   :  { %v2835_v48 = vmul.f32 %v5317_v28, %v2833_v42 }
0x1280   :  { %3177 = vrot.lane.b32.xlu1 %v2835_v48, %s5429_s20 }
0x128d   :  { %v3003_v23 = vpop.permute.xlu1 %3002 }
0x128e   :  { %v3005_v30 = vmul.f32 %v5321_v54, %v3003_v23 }
0x1290   :  { %3352 = vrot.lane.b32.xlu0 %v3005_v30, %s5429_s20 }
0x1295   :  { %v3173_v44 = vpop.permute.xlu0 %3172 }
0x1296   :  { %v3175_v45 = vmul.f32 %v5323_v58, %v3173_v44 }
0x1298   :  { %3522 = vrot.lane.b32.xlu1 %v3175_v45, %s5429_s20 }
0x12f2   :  { %v3178_v0 = vpop.permute.xlu1 %3177 }
0x12f3   :  { %5053 = vmatmul.mubr.msk.f32.vlgmr.msra.gmra.mxu0 %vm86_vm4, %v3178_v0 }
0x12f4   :  { %5072 = vmatpush3.msra.mxu0 %v6065_v36  ;;  %5079 = vmatprep.mubr.msk.f32.mxu0 %vm5427_vm3, %v5426_v2 }
0x12f5   :  { %5073 = vmatprep.subr.mxu0 %v5426_v2 }
0x12f6   :  { %5074 = vmatpush3.msra.mxu0 %v6074_v16 }
0x12f7   :  { %5075 = vmatprep.subr.mxu0 %v5426_v2 }
0x12f8   :  { %5076 = vmatpush3.msra.mxu0 %v6081_v17 }
0x12f9   :  { %5077 = vmatprep.subr.mxu0 %v5426_v2 }
0x12fa   :  { %5078 = vmatpush3.msra.mxu0 %v6088_v12 }
0x12fb   :  { %5080 = vmatmul.mubr.msk.f32.vlgmr.msra.gmra.mxu0 %vm86_vm4, %v3178_v0  ;;  %5093 = vmatprep.subr.mxu0 %v5426_v2 }
0x12fc   :  { %5094 = vmatpush3.msra.mxu0 %v6220_v52  ;;  %5101 = vmatprep.mubr.msk.f32.mxu0 %vm5427_vm3, %v5426_v2 }
0x12fd   :  { %5095 = vmatprep.subr.mxu0 %v5426_v2 }
0x12fe   :  { %5096 = vmatpush3.msra.mxu0 %v6229_v4 }
0x12ff   :  { %5097 = vmatprep.subr.mxu0 %v5426_v2 }
0x1300   :  { %5098 = vmatpush3.msra.mxu0 %v6236_v5 }
0x1301   :  { %5099 = vmatprep.subr.mxu0 %v5426_v2 }
0x1302   :  { %5100 = vmatpush3.msra.mxu0 %v6243_v33  ;;  %v3353_v49 = vpop.permute.xlu0 %3352 }
0x1303   :  { %5069 = vmatmul.mubr.msk.f32.vlgmr.msra.gmra.mxu1 %vm86_vm4, %v3353_v49  ;;  %5102 = vmatmul.mubr.msk.f32.vlgmr.msra.gmra.mxu0 %vm86_vm4, %v3353_v49 }
0x1304   :  { %5083 = vmatpush3.msra.mxu1 %v6251_v35  ;;  %5090 = vmatprep.mubr.msk.f32.mxu1 %vm5427_vm3, %v5426_v2 }
0x1305   :  { %5084 = vmatprep.subr.mxu1 %v5426_v2  ;;  %5115 = vmatprep.subr.mxu0 %v5426_v2 }
0x1306   :  { %5085 = vmatpush3.msra.mxu1 %v6261_v37  ;;  %5116 = vmatpush3.msra.mxu0 %v6065_v36  ;;  %v3322_v36 = vpop.f32.mrf.mxu1 }
0x1307   :  { %5086 = vmatprep.subr.mxu1 %v5426_v2  ;;  %5117 = vmatprep.subr.mxu0 %v5426_v2 }
0x1308   :  { %5087 = vmatpush3.msra.mxu1 %v6272_v40  ;;  %5118 = vmatpush3.msra.mxu0 %v6074_v16  ;;  %v5059_v16 = vpop.f32.mrf.mxu1 }
0x1309   :  { %5088 = vmatprep.subr.mxu1 %v5426_v2  ;;  %5119 = vmatprep.subr.mxu0 %v5426_v2 }
0x130a   :  { %v6377_v60 = vpop.permute.xlu1 %3522  ;;  %5089 = vmatpush3.msra.mxu1 %v6280_v29  ;;  %5120 = vmatpush3.msra.mxu0 %v6081_v17 }
0x130b   :  { %5091 = vmatmul.mubr.msk.f32.vlgmr.msra.gmra.mxu1 %vm86_vm4, %v6377_v60  ;;  %5121 = vmatprep.subr.mxu0 %v5426_v2 }
0x130c   :  { %5122 = vmatpush3.msra.mxu0 %v6088_v12  ;;  %5123 = vmatprep.mubr.msk.f32.mxu0 %vm5427_vm3, %v5426_v2 }
0x130d   :  { %5104 = vmatprep.subr.mxu1 %v5426_v2  ;;  %5137 = vmatprep.subr.mxu0 %v5426_v2 }
0x130e   :  { %5105 = vmatpush3.msra.mxu1 %v6033_v19  ;;  %5112 = vmatprep.mubr.msk.f32.mxu1 %vm5427_vm3, %v5426_v2 }
0x130f   :  { %5106 = vmatprep.subr.mxu1 %v5426_v2 }
0x1310   :  { %5107 = vmatpush3.msra.mxu1 %v6042_v63 }
0x1311   :  { %5108 = vmatprep.subr.mxu1 %v5426_v2 }
0x1312   :  { %5109 = vmatpush3.msra.mxu1 %v6049_v6 }
0x1313   :  { %5110 = vmatprep.subr.mxu1 %v5426_v2 }
0x1314   :  { %5111 = vmatpush3.msra.mxu1 %v6195_v56 }
0x1315   :  { %5126 = vmatprep.subr.mxu1 %v5426_v2 }
0x13b3   :  { %v3247_v19 = vpop.f32.mrf.mxu0 }
0x13b4   :  { %v3323_v17 = vadd.f32 %v3322_v36, %v3247_v19 }
0x13b5   :  { %v5054_v12 = vpop.f32.mrf.mxu0 }
0x13b6   :  { %v3326_v24 = vadd.f32 %v6149_v22, %v3323_v17 }
0x13b8   :  { %5330 = vtanh.f32 %v3326_v24  ;;  %v4422_v26 = vmul.f32 -1.442695, %v3326_v24 }
0x13bb   :  { %v3492_v38 = vpop.f32.mrf.mxu0 }
0x13bd   :  { %v5081_v63 = vpop.f32.mrf.mxu0 }
0x13c3   :  { %v3422_v25 = vpop.f32.mrf.mxu1  ;;  %v3662_v1 = vpop.f32.mrf.mxu0 }
0x13c4   :  { %v3493_v27 = vadd.f32 %v3492_v38, %v3422_v25 }
0x13c5   :  { %v5331_v6 = vpop.eup %5330  ;;  %v5070_v28 = vpop.f32.mrf.mxu1 }
0x13c6   :  { %v5103_v46 = vpop.f32.mrf.mxu0  ;;  %v3496_v56 = vadd.f32 %v6155_v47, %v3493_v27  ;;  %3336 = vrot.lane.b32.xlu0 %v5331_v6, %s5428_s19 }
0x13c8   :  { %5332 = vtanh.f32 %v3496_v56  ;;  %v4425_v58 = vmul.f32 -1.442695, %v3496_v56 }
0x13cb   :  { %v3592_v53 = vpop.f32.mrf.mxu1 }
0x13cc   :  { %v3663_v50 = vadd.f32 %v3662_v1, %v3592_v53 }
0x13cd   :  { %v5092_v51 = vpop.f32.mrf.mxu1 }
0x13ce   :  { %v3666_v54 = vadd.f32 %v6301_v43, %v3663_v50 }
0x13d0   :  { %5334 = vtanh.f32 %v3666_v54  ;;  %v4428_v59 = vmul.f32 -1.442695, %v3666_v54 }
0x13d1   :  { %5336 = vpow2.f32 %v4422_v26 }
0x13d2   :  { %5338 = vpow2.f32 %v4425_v58 }
0x13d5   :  { %v5333_v22 = vpop.eup %5332 }
0x13d6   :  { %3506 = vrot.lane.b32.xlu1 %v5333_v22, %s5428_s19 }
0x13dd   :  { %v5335_v55 = vpop.eup %5334 }
0x13de   :  { %3676 = vrot.lane.b32.xlu0 %v5335_v55, %s5428_s19  ;;  %v5337_v3 = vpop.eup %5336 }
0x13df   :  { %v3330_v62 = vadd.f32 1.0, %v5337_v3  ;;  %v5339_v15 = vpop.eup %5338 }
0x13e0   :  { %v3500_v39 = vadd.f32 1.0, %v5339_v15 }
0x13e1   :  { %5340 = vrcp.f32 %v3330_v62 }
0x13e2   :  { %5342 = vpow2.f32 %v4428_v59 }
0x13e3   :  { %5344 = vrcp.f32 %v3500_v39 }
0x13ee   :  { %v5341_v8 = vpop.eup %5340 }
0x13ef   :  { %v5343_v11 = vpop.eup %5342  ;;  %v3334_v23 = vmul.f32 %v5341_v8, %v6310_v61 }
0x13f0   :  { %v3670_v41 = vadd.f32 1.0, %v5343_v11  ;;  %v5345_v32 = vpop.eup %5344 }
0x13f1   :  { %v3504_v45 = vmul.f32 %v5345_v32, %v6314_v10 }
0x13f2   :  { %5346 = vrcp.f32 %v3670_v41 }
0x13ff   :  { %v5347_v18 = vpop.eup %5346 }
0x1400   :  { %v3674_v16 = vmul.f32 %v5347_v18, %v6319_v9 }
0x1438   :  { %v3337_v7 = vpop.permute.xlu0 %3336 }
0x1439   :  { %v3339_v31 = vmul.f32 %v5341_v8, %v3337_v7 }
0x143b   :  { %3341 = vrot.lane.b32.xlu1 %v3339_v31, %s5429_s20 }
0x1448   :  { %v3507_v21 = vpop.permute.xlu1 %3506 }
0x1449   :  { %v3509_v14 = vmul.f32 %v5345_v32, %v3507_v21 }
0x144b   :  { %3511 = vrot.lane.b32.xlu0 %v3509_v14, %s5429_s20 }
0x1450   :  { %v3677_v42 = vpop.permute.xlu0 %3676 }
0x1451   :  { %v3679_v48 = vmul.f32 %v5347_v18, %v3677_v42 }
0x1453   :  { %3681 = vrot.lane.b32.xlu1 %v3679_v48, %s5429_s20 }
0x14ad   :  { %v3342_v30 = vpop.permute.xlu1 %3341 }
0x14ae   :  { %v3344_v44 = vadd.f32 %v3342_v30, %v3334_v23 }
0x14b0   :  { %5348 = vtanh.f32 %v3344_v44 }
0x14bd   :  { %v5349_v0 = vpop.eup %5348  ;;  %v3512_v49 = vpop.permute.xlu0 %3511 }
0x14be   :  { %v6410_v36 = vadd.f32 %v3512_v49, %v3504_v45  ;;  %3347 = vrot.lane.b32.xlu0 %v5349_v0, %s5428_s19 }
0x14c0   :  { %5350 = vtanh.f32 %v6410_v36 }
0x14c5   :  { %v3682_v19 = vpop.permute.xlu1 %3681 }
0x14c6   :  { %v6415_v17 = vadd.f32 %v3682_v19, %v3674_v16 }
0x14c8   :  { %5352 = vtanh.f32 %v6415_v17 }
0x14cd   :  { %v5351_v61 = vpop.eup %5350 }
0x14ce   :  { %3517 = vrot.lane.b32.xlu1 %v5351_v61, %s5428_s19 }
0x14d5   :  { %v5353_v12 = vpop.eup %5352 }
0x14d6   :  { %3687 = vrot.lane.b32.xlu0 %v5353_v12, %s5428_s19 }
0x1530   :  { %v3348_v10 = vpop.permute.xlu0 %3347 }
0x1531   :  { %v3350_v24 = vmul.f32 %v5341_v8, %v3348_v10 }
0x1533   :  { %3767 = vrot.lane.b32.xlu0 %v3350_v24, %s5429_s20 }
0x1540   :  { %v3518_v38 = vpop.permute.xlu1 %3517 }
0x1541   :  { %v3520_v63 = vmul.f32 %v5345_v32, %v3518_v38 }
0x1543   :  { %3692 = vrot.lane.b32.xlu1 %v3520_v63, %s5429_s20 }
0x1548   :  { %v3688_v9 = vpop.permute.xlu0 %3687 }
0x1549   :  { %v6422_v25 = vmul.f32 %v5347_v18, %v3688_v9 }
0x154b   :  { %3867 = vrot.lane.b32.xlu1 %v6422_v25, %s5429_s20  ;;  %v5176_v9 = vpack.i.bf16 %v5928_v34, %v6422_v25  ;;  %v4262_v34 = vld [vmem:[%s6620_s10 + $0xe8] sm:$0xff] }
0x154c   :  { %v4246_v25 = vld [vmem:[%s6620_s10 + $0x68] sm:$0xff] }
0x15a5   :  { %v3768_v1 = vpop.permute.xlu0 %3767 }
0x15a6   :  { %5124 = vmatmul.mubr.msk.f32.vlgmr.msra.gmra.mxu0 %vm86_vm4, %v3768_v1  ;;  %v4248_v1 = vld [vmem:[%s6620_s10 + $0x78] sm:$0xff] }
0x15a7   :  { %5138 = vmatpush3.msra.mxu0 %v6220_v52  ;;  %5145 = vmatprep.mubr.msk.f32.mxu0 %vm5427_vm3, %v5426_v2 }
0x15a8   :  { %5139 = vmatprep.subr.mxu0 %v5426_v2 }
0x15a9   :  { %5140 = vmatpush3.msra.mxu0 %v6229_v4 }
0x15aa   :  { %5141 = vmatprep.subr.mxu0 %v5426_v2 }
0x15ab   :  { %5142 = vmatpush3.msra.mxu0 %v6236_v5 }
0x15ac   :  { %5143 = vmatprep.subr.mxu0 %v5426_v2 }
0x15ad   :  { %5144 = vmatpush3.msra.mxu0 %v6243_v33 }
0x15ae   :  { %5159 = vmatprep.subr.mxu0 %v5426_v2 }
0x15b5   :  { %v3693_v27 = vpop.permute.xlu1 %3692 }
0x15b6   :  { %5113 = vmatmul.mubr.msk.f32.vlgmr.msra.gmra.mxu1 %vm86_vm4, %v3693_v27  ;;  %5146 = vmatmul.mubr.msk.f32.vlgmr.msra.gmra.mxu0 %vm86_vm4, %v3693_v27  ;;  %v4263_v27 = vld [vmem:[%s6620_s10 + $0xf0] sm:$0xff] }
0x15b7   :  { %5127 = vmatpush3.msra.mxu1 %v6251_v35  ;;  %5134 = vmatprep.mubr.msk.f32.mxu1 %vm5427_vm3, %v5426_v2 }
0x15b8   :  { %5128 = vmatprep.subr.mxu1 %v5426_v2  ;;  %5160 = vmatpush3.msra.mxu0 %v6220_v52 }
0x15b9   :  { %5129 = vmatpush3.msra.mxu1 %v6261_v37  ;;  %5161 = vmatprep.subr.mxu0 %v5426_v2 }
0x15ba   :  { %5130 = vmatprep.subr.mxu1 %v5426_v2  ;;  %5162 = vmatpush3.msra.mxu0 %v6229_v4 }
0x15bb   :  { %5131 = vmatpush3.msra.mxu1 %v6272_v40  ;;  %5163 = vmatprep.subr.mxu0 %v5426_v2 }
0x15bc   :  { %5132 = vmatprep.subr.mxu1 %v5426_v2  ;;  %5164 = vmatpush3.msra.mxu0 %v6236_v5 }
0x15bd   :  { %5133 = vmatpush3.msra.mxu1 %v6280_v29  ;;  %v3868_v6 = vpop.permute.xlu1 %3867  ;;  %5165 = vmatprep.subr.mxu0 %v5426_v2 }
0x15be   :  { %5135 = vmatmul.mubr.msk.f32.vlgmr.msra.gmra.mxu1 %vm86_vm4, %v3868_v6  ;;  %5148 = vmatprep.subr.mxu1 %v5426_v2  ;;  %v4247_v6 = vld [vmem:[%s6620_s10 + $0x70] sm:$0xff] }
0x15bf   :  { %5166 = vmatpush3.msra.mxu0 %v6243_v33  ;;  %5167 = vmatprep.mubr.msk.f32.mxu0 %vm5427_vm3, %v5426_v2 }
0x15c0   :  { %5149 = vmatpush3.msra.mxu1 %v6251_v35  ;;  %5156 = vmatprep.mubr.msk.f32.mxu1 %vm5427_vm3, %v5426_v2 }
0x15c1   :  { %5150 = vmatprep.subr.mxu1 %v5426_v2 }
0x15c2   :  { %5151 = vmatpush3.msra.mxu1 %v6261_v37 }
0x15c3   :  { %5152 = vmatprep.subr.mxu1 %v5426_v2 }
0x15c4   :  { %5153 = vmatpush3.msra.mxu1 %v6272_v40 }
0x15c5   :  { %5154 = vmatprep.subr.mxu1 %v5426_v2 }
0x15c6   :  { %5155 = vmatpush3.msra.mxu1 %v6280_v29 }
0x1666   :  { %v3837_v52 = vpop.f32.mrf.mxu0 }
0x1668   :  { %v5125_v4 = vpop.f32.mrf.mxu0 }
0x1669   :  { %v4245_v4 = vld [vmem:[%s6620_s10 + $0x60] sm:$0xff] }
0x1676   :  { %v3762_v5 = vpop.f32.mrf.mxu1  ;;  %v4007_v33 = vpop.f32.mrf.mxu0 }
0x1677   :  { %v3838_v35 = vadd.f32 %v3837_v52, %v3762_v5  ;;  %v4261_v52 = vld [vmem:[%s6620_s10 + $0xe0] sm:$0xff]  ;;  %v4260_v5 = vld [vmem:[%s6620_s10 + $0xd8] sm:$0xff] }
0x1678   :  { %v5114_v28 = vpop.f32.mrf.mxu1  ;;  %v5147_v46 = vpop.f32.mrf.mxu0 }
0x1679   :  { %v3841_v56 = vadd.f32 %v6155_v47, %v3838_v35  ;;  %v4259_v35 = vld [vmem:[%s6620_s10 + $0xd0] sm:$0xff]  ;;  %v4258_v46 = vld [vmem:[%s6620_s10 + $0xc8] sm:$0xff] }
0x167a   :  { %v4243_v28 = vld [vmem:[%s6620_s10 + $0x50] sm:$0xff] }
0x167b   :  { %5354 = vtanh.f32 %v3841_v56  ;;  %v4431_v29 = vmul.f32 -1.442695, %v3841_v56  ;;  %v4242_v56 = vld [vmem:[%s6620_s10 + $0x48] sm:$0xff] }
0x167e   :  { %v3937_v53 = vpop.f32.mrf.mxu1 }
0x167f   :  { %v4008_v37 = vadd.f32 %v4007_v33, %v3937_v53  ;;  %v4244_v33 = vld [vmem:[%s6620_s10 + $0x58] sm:$0xff]  ;;  %v4257_v53 = vld [vmem:[%s6620_s10 + $0xc0] sm:$0xff] }
0x1680   :  { %v5136_v50 = vpop.f32.mrf.mxu1 }
0x1681   :  { %v4011_v51 = vadd.f32 %v6301_v43, %v4008_v37  ;;  %v4241_v37 = vld [vmem:[%s6620_s10 + $0x40] sm:$0xff]  ;;  %v4256_v50 = vld [vmem:[%s6620_s10 + $0xb8] sm:$0xff] }
0x1683   :  { %5356 = vtanh.f32 %v4011_v51  ;;  %v4434_v54 = vmul.f32 -1.442695, %v4011_v51  ;;  %v4240_v51 = vld [vmem:[%s6620_s10 + $0x38] sm:$0xff] }
0x1684   :  { %5358 = vpow2.f32 %v4431_v29  ;;  %v4254_v29 = vld [vmem:[%s6620_s10 + $0xa8] sm:$0xff] }
0x1685   :  { %5360 = vpow2.f32 %v4434_v54  ;;  %v4238_v54 = vld [vmem:[%s6620_s10 + $0x28] sm:$0xff] }
0x1688   :  { %v5355_v40 = vpop.eup %5354 }
0x1689   :  { %3851 = vrot.lane.b32.xlu0 %v5355_v40, %s5428_s19  ;;  %v4255_v40 = vld [vmem:[%s6620_s10 + $0xb0] sm:$0xff] }
0x1690   :  { %v5357_v2 = vpop.eup %5356 }
0x1691   :  { %4021 = vrot.lane.b32.xlu1 %v5357_v2, %s5428_s19  ;;  %v5359_v22 = vpop.eup %5358  ;;  %v4239_v2 = vld [vmem:[%s6620_s10 + $0x30] sm:$0xff] }
0x1692   :  { %v3845_v55 = vadd.f32 1.0, %v5359_v22  ;;  %v5361_v47 = vpop.eup %5360  ;;  %v4253_v22 = vld [vmem:[%s6620_s10 + $0xa0] sm:$0xff] }
0x1693   :  { %v4015_v26 = vadd.f32 1.0, %v5361_v47 }
0x1694   :  { %5362 = vrcp.f32 %v3845_v55 }
0x1695   :  { %5364 = vrcp.f32 %v4015_v26 }
0x16a1   :  { %v5363_v58 = vpop.eup %5362 }
0x16a2   :  { %v5365_v59 = vpop.eup %5364  ;;  %v3849_v8 = vmul.f32 %v5363_v58, %v6410_v36 }
0x16a3   :  { %v4019_v11 = vmul.f32 %v5365_v59, %v6415_v17 }
0x16fb   :  { %v3852_v3 = vpop.permute.xlu0 %3851 }
0x16fc   :  { %v3854_v62 = vmul.f32 %v5363_v58, %v3852_v3  ;;  %v4252_v3 = vld [vmem:[%s6620_s10 + $0x98] sm:$0xff] }
0x16fe   :  { %3856 = vrot.lane.b32.xlu0 %v3854_v62, %s5429_s20  ;;  %v4236_v62 = vld [vmem:[%s6620_s10 + $0x18] sm:$0xff] }
0x1703   :  { %v4022_v15 = vpop.permute.xlu1 %4021 }
0x1704   :  { %v4024_v39 = vmul.f32 %v5365_v59, %v4022_v15  ;;  %v4235_v15 = vld [vmem:[%s6620_s10 + $0x10] sm:$0xff] }
0x1706   :  { %4026 = vrot.lane.b32.xlu1 %v4024_v39, %s5429_s20  ;;  %v4250_v39 = vld [vmem:[%s6620_s10 + $0x88] sm:$0xff] }
0x1770   :  { %v3857_v7 = vpop.permute.xlu0 %3856 }
0x1771   :  { %v3859_v31 = vadd.f32 %v3857_v7, %v3849_v8  ;;  %v4234_v8 = vld [vmem:[%s6620_s10 + $0x8] sm:$0xff]  ;;  %v4249_v7 = vld [vmem:[%s6620_s10 + $0x80] sm:$0xff] }
0x1773   :  { %5366 = vtanh.f32 %v3859_v31  ;;  %v4233_v31 = vld [vmem:[%s6620_s10] sm:$0xff] }
0x1778   :  { %v4027_v41 = vpop.permute.xlu1 %4026 }
0x1779   :  { %v6476_v32 = vadd.f32 %v4027_v41, %v4019_v11 }
0x177b   :  { %5368 = vtanh.f32 %v6476_v32 }
0x1780   :  { %v5367_v21 = vpop.eup %5366 }
0x1781   :  { %3862 = vrot.lane.b32.xlu0 %v5367_v21, %s5428_s19 }
0x1788   :  { %v5369_v14 = vpop.eup %5368 }
0x1789   :  { %4032 = vrot.lane.b32.xlu1 %v5369_v14, %s5428_s19 }
0x17f3   :  { %v3863_v18 = vpop.permute.xlu0 %3862 }
0x17f4   :  { %v3865_v42 = vmul.f32 %v5363_v58, %v3863_v18  ;;  %v4237_v58 = vld [vmem:[%s6620_s10 + $0x20] sm:$0xff] }
0x17f6   :  { %4112 = vrot.lane.b32.xlu1 %v3865_v42, %s5429_s20 }
0x17fb   :  { %v4033_v48 = vpop.permute.xlu1 %4032 }
0x17fc   :  { %v6482_v23 = vmul.f32 %v5365_v59, %v4033_v48  ;;  %v4251_v59 = vld [vmem:[%s6620_s10 + $0x90] sm:$0xff] }
0x17fe   :  { %4037 = vrot.lane.b32.xlu0 %v6482_v23, %s5429_s20  ;;  %v5181_v41 = vpack.i.bf16 %v6057_v13, %v6482_v23 }
0x1868   :  { %v4113_v30 = vpop.permute.xlu1 %4112 }
0x1869   :  { %5168 = vmatmul.mubr.msk.f32.vlgmr.msra.gmra.mxu0 %vm86_vm4, %v4113_v30 }
0x1870   :  { %v4038_v44 = vpop.permute.xlu0 %4037 }
0x1871   :  { %5157 = vmatmul.mubr.msk.f32.vlgmr.msra.gmra.mxu1 %vm86_vm4, %v4038_v44 }
0x1929   :  { %v4182_v45 = vpop.f32.mrf.mxu0 }
0x192b   :  { %v5169_v0 = vpop.f32.mrf.mxu0 }
0x1931   :  { %v4107_v49 = vpop.f32.mrf.mxu1 }
0x1932   :  { %v4183_v36 = vadd.f32 %v4182_v45, %v4107_v49 }
0x1933   :  { %v5158_v16 = vpop.f32.mrf.mxu1 }
0x1934   :  { %v4186_v19 = vadd.f32 %v6301_v43, %v4183_v36  ;;  %v4264_v43 = vld [vmem:[%s6620_s10 + $0xf8] sm:$0xff] }
0x1935   :  { %4655 = vmatprep.subr.mxu1 %v4264_v43 }
0x1936   :  { %5370 = vtanh.f32 %v4186_v19  ;;  %v4437_v61 = vmul.f32 -1.442695, %v4186_v19  ;;  %4656 = vmatpush3.msra.mxu1 %v4248_v1  ;;  %v4438_v19 = vld [vmem:[%s6621_s11] ss:$0 sm:$0xff] }
0x1937   :  { %4657 = vmatprep.subr.mxu1 %v4263_v27 }
0x1938   :  { %5372 = vpow2.f32 %v4437_v61  ;;  %4658 = vmatpush3.msra.mxu1 %v4247_v6 }
0x1939   :  { %4659 = vmatprep.subr.mxu1 %v4262_v34 }
0x193a   :  { %4660 = vmatpush3.msra.mxu1 %v4246_v25 }
0x193b   :  { %4661 = vmatprep.subr.mxu1 %v4261_v52 }
0x193c   :  { %4662 = vmatpush3.msra.mxu1 %v4245_v4 }
0x193d   :  { %4663 = vmatprep.subr.mxu1 %v4260_v5 }
0x193e   :  { %4664 = vmatpush3.msra.mxu1 %v4244_v33 }
0x193f   :  { %4665 = vmatprep.subr.mxu1 %v4259_v35 }
0x1940   :  { %4666 = vmatpush3.msra.mxu1 %v4243_v28 }
0x1941   :  { %4667 = vmatprep.subr.mxu1 %v4258_v46 }
0x1942   :  { %4668 = vmatpush3.msra.mxu1 %v4242_v56 }
0x1943   :  { %v5371_v17 = vpop.eup %5370  ;;  %4669 = vmatprep.subr.mxu1 %v4257_v53 }
0x1944   :  { %4196 = vrot.lane.b32.xlu0 %v5371_v17, %s5428_s19  ;;  %4670 = vmatpush3.msra.mxu1 %v4241_v37 }
0x1945   :  { %v5373_v12 = vpop.eup %5372  ;;  %4671 = vmatprep.subr.mxu1 %v4256_v50 }
0x1946   :  { %v4190_v10 = vadd.f32 1.0, %v5373_v12  ;;  %4672 = vmatpush3.msra.mxu1 %v4240_v51 }
0x1947   :  { %4673 = vmatprep.subr.mxu1 %v4255_v40 }
0x1948   :  { %5374 = vrcp.f32 %v4190_v10  ;;  %4674 = vmatpush3.msra.mxu1 %v4239_v2 }
0x1949   :  { %4675 = vmatprep.subr.mxu1 %v4254_v29 }
0x194a   :  { %4676 = vmatpush3.msra.mxu1 %v4238_v54 }
0x194b   :  { %4677 = vmatprep.subr.mxu1 %v4253_v22 }
0x194c   :  { %4678 = vmatpush3.msra.mxu1 %v4237_v58 }
0x194d   :  { %4679 = vmatprep.subr.mxu1 %v4252_v3 }
0x194e   :  { %4680 = vmatpush3.msra.mxu1 %v4236_v62 }
0x194f   :  { %4681 = vmatprep.subr.mxu1 %v4251_v59 }
0x1950   :  { %4682 = vmatpush3.msra.mxu1 %v4235_v15 }
0x1951   :  { %4683 = vmatprep.subr.mxu1 %v4250_v39 }
0x1952   :  { %4684 = vmatpush3.msra.mxu1 %v4234_v8 }
0x1953   :  { %4685 = vmatprep.subr.mxu1 %v4249_v7 }
0x1954   :  { %4686 = vmatpush3.msra.mxu1 %v4233_v31 }
0x1955   :  { %v6490_v24 = vpop.eup %5374 }
0x1956   :  { %v4194_v55 = vmul.f32 %v6490_v24, %v6476_v32 }
0x19b6   :  { %v4197_v38 = vpop.permute.xlu0 %4196 }
0x19b7   :  { %v4199_v63 = vmul.f32 %v6490_v24, %v4197_v38 }
0x19b9   :  { %4201 = vrot.lane.b32.xlu1 %v4199_v63, %s5429_s20 }
0x19bd   :  { %5177 = vrot.lane.b32.xlu1 %v5176_v9, %s5428_s19 }
0x1a2b   :  { %v4202_v47 = vpop.permute.xlu1 %4201 }
0x1a2c   :  { %v4204_v26 = vadd.f32 %v4202_v47, %v4194_v55 }
0x1a2e   :  { %5376 = vtanh.f32 %v4204_v26 }
0x1a2f   :  { %v5178_v32 = vpop.permute.xlu1 %5177 }
0x1a30   :  { %v5180_v14 = vunpack.i.h.bf16 %v5178_v32  ;;  %v5179_v18 = vunpack.i.l.bf16 %v5178_v32 }
0x1a32   :  { %v4225_v44 = vsel %vm86_vm4, %v5872_v20, %v5180_v14  ;;  %v4230_v45 = vsel %vm86_vm4, %v6377_v60, %v5179_v18 }
0x1a3b   :  { %v5377_v11 = vpop.eup %5376 }
0x1a3c   :  { %4207 = vrot.lane.b32.xlu0 %v5377_v11, %s5428_s19 }
0x1a40   :  { %5182 = vrot.lane.b32.xlu0 %v5181_v41, %s5430_s18 }
0x1aae   :  { %v4208_v21 = vpop.permute.xlu0 %4207 }
0x1aaf   :  { %v4210_v0 = vmul.f32 %v6490_v24, %v4208_v21 }
0x1ab2   :  { %v5183_v42 = vpop.permute.xlu0 %5182 }
0x1ab3   :  { %v5185_v48 = vunpack.i.h.bf16 %v5183_v42  ;;  %v5184_v30 = vunpack.i.l.bf16 %v5183_v42 }
0x1ab5   :  { %v4227_v13 = vsel %vm4226_vm5, %v4225_v44, %v5185_v48  ;;  %v4231_v23 = vsel %vm4226_vm5, %v4230_v45, %v5184_v30 }
0x1ab6   :  { %v4232_v49 = vsel %vm4228_vm6, %v4231_v23, %v4210_v0  ;;  %v4229_v36 = vsel %vm4228_vm6, %v4227_v13, %v6201_v57 }
0x1ab7   :  { %4336 = vmatprep.mubr.f32.mxu1 %v4232_v49 }
0x1ab8   :  { %4337 = vmatmul.mubr.f32.vlgmr.msra.gmra.mxu1 %v4229_v36 }
0x1b78   :  { %v4687_v16 = vpop.f32.mrf.mxu1 }
0x1b7a   :  { %v4688_v17 = vpop.f32.mrf.mxu1 }
0x1b7b   :  { %v4689_v20 = vadd.f32 %v4688_v17, %v4687_v16 }
0x1b7d   :  { %v4339_v60 = vadd.f32 %v4689_v20, %v4438_v19 }
0x1b7f   :  { %4343 = vst.msk [vmem:[#allocation2] sm:$0x3] %vm4342_vm7, %v4339_v60 }
0x1b80   :  { %5415 = shalt.err (!%p5412_p4)
}
0x1b81   :  { %4353 = dma.vmem_to_hbm [thread:$0]  %s4351_s22, 32, %s6622_s12, [#allocation3]  }
0x1b82   :  { %5424 = dma.done.wait [#allocation3], 32  }
0x1b83   :  { %5425 = vsyncadd [#allocation3], 4294967264 }
0x1b84   :  { %4357 = vsyncpa [#allocation3], 1 }

</bundles_post_ra>
